<compile_context>
chip_gen: v7x
topology: tpu7x:2x2x1
jax: 0.10.0
libtpu: 0.0.40
codegen_flags: <defaults>
</compile_context>

<pallas_src>
import functools

import jax
import jax.numpy as jnp
from jax import lax
from jax.experimental import pallas as pl
from jax.experimental.pallas import tpu as pltpu


# ----------------------------- Pallas kernel --------------------------------

def _cnn_classifier_kernel(x_ref, w_all_ref, b3_ref, b4_ref, b5_ref,
                           wl_ref, bl_ref, out_ref, *,
                           filter_sizes, num_filters):
    """Fused Conv1d(x3) + global-max-pool + bias + ReLU + Linear.

    x_ref    : (TB, S, E)        bf16  embedded tokens (batch tile)
    w_all_ref: (E, sum(fs)*F)    bf16  all conv taps concatenated along out axis
    b*_ref   : (1, F)            f32   conv biases
    wl_ref   : (3F, C_pad)       f32   classifier weight (classes zero-padded to 128)
    bl_ref   : (1, C_pad)        f32   classifier bias   (zero-padded)
    out_ref  : (TB, C_pad)       f32   padded logits
    """
    x = x_ref[...]                                   # (TB, S, E) bf16
    _, S, _ = x.shape
    F = num_filters

    # One wide MXU matmul covering every tap of every filter width.
    y = lax.dot_general(
        x, w_all_ref[...],
        dimension_numbers=(((2,), (0,)), ((), ())),
        preferred_element_type=jnp.float32)          # (TB, S, sum(fs)*F) f32

    b_refs = (b3_ref, b4_ref, b5_ref)
    col = 0
    logits = None
    for i, fs in enumerate(filter_sizes):
        L = S - fs + 1
        # Conv as a sum of statically shifted slices of the fused product.
        acc = y[:, 0:L, col:col + F]
        for k in range(1, fs):
            acc = acc + y[:, k:k + L, col + k * F: col + (k + 1) * F]
        col += fs * F

        # Pool first, then bias + ReLU (exact: bias is time-constant, ReLU monotone).
        pooled = jnp.max(acc, axis=1)                              # (TB, F)
        pooled = jnp.maximum(pooled + b_refs[i][...], 0.0)         # (TB, F)

        # No concat: accumulate per-branch slab matmuls into the logits.
        slab = wl_ref[i * F:(i + 1) * F, :]                        # (F, C_pad)
        contrib = jnp.dot(pooled, slab, preferred_element_type=jnp.float32)
        logits = contrib if logits is None else logits + contrib

    out_ref[...] = logits + bl_ref[...]               # lane-dense (TB, 128) store


# ------------------------------ wrapper --------------------------------------

def simple_cnn_forward(input_ids, params, *, filter_sizes=(3, 4, 5),
                       interpret=False):
    """input_ids: (B, S) int32 token ids -> (B, C) f32 logits."""
    # Glue: embedding gather in plain JAX (see TODO above about fusing it).
    x = jnp.take(params["embedding"], input_ids, axis=0)           # (B, S, E) f32
    B, S, E = x.shape
    F = params[f"conv{filter_sizes[0]}_b"].shape[-1]
    C = params["linear_b"].shape[-1]

    # bf16 matmul inputs; f32 accumulation happens inside the kernel.
    x = x.astype(jnp.bfloat16)
    w_all = jnp.concatenate(
        [params[f"conv{fs}_w"][k] for fs in filter_sizes for k in range(fs)],
        axis=1).astype(jnp.bfloat16)                               # (E, sum(fs)*F)

    # Lane-dense output: pad class dim to 128 (zeros in the padded weight/bias cols).
    C_pad = 128
    wl = jnp.zeros((len(filter_sizes) * F, C_pad), jnp.float32)
    wl = wl.at[:, :C].set(params["linear_w"].astype(jnp.float32))
    bl = jnp.zeros((1, C_pad), jnp.float32)
    bl = bl.at[:, :C].set(params["linear_b"].astype(jnp.float32))

    # Batch tiling: sublane-aligned tiles, parallel grid axis (megacore-friendly).
    TB = min(128, ((B + 7) // 8) * 8)
    B_pad = ((B + TB - 1) // TB) * TB
    if B_pad != B:
        x = jnp.pad(x, ((0, B_pad - B), (0, 0), (0, 0)))
    grid = (B_pad // TB,)

    kernel = functools.partial(_cnn_classifier_kernel,
                               filter_sizes=tuple(filter_sizes),
                               num_filters=F)

    out = pl.pallas_call(
        kernel,
        out_shape=jax.ShapeDtypeStruct((B_pad, C_pad), jnp.float32),
        grid_spec=pltpu.PrefetchScalarGridSpec(
            num_scalar_prefetch=0,
            grid=grid,
            in_specs=[
                pl.BlockSpec((TB, S, E), lambda b: (b, 0, 0)),     # activation tile
                pl.BlockSpec(w_all.shape, lambda b: (0, 0)),       # fused conv weights
                pl.BlockSpec(params[f"conv{filter_sizes[0]}_b"].shape,
                             lambda b: (0, 0)),
                pl.BlockSpec(params[f"conv{filter_sizes[1]}_b"].shape,
                             lambda b: (0, 0)),
                pl.BlockSpec(params[f"conv{filter_sizes[2]}_b"].shape,
                             lambda b: (0, 0)),
                pl.BlockSpec(wl.shape, lambda b: (0, 0)),
                pl.BlockSpec(bl.shape, lambda b: (0, 0)),
            ],
            out_specs=pl.BlockSpec((TB, C_pad), lambda b: (b, 0)),
        ),
        compiler_params=pltpu.CompilerParams(
            dimension_semantics=("parallel",)),
        interpret=interpret,
    )(x, w_all,
      params[f"conv{filter_sizes[0]}_b"],
      params[f"conv{filter_sizes[1]}_b"],
      params[f"conv{filter_sizes[2]}_b"],
      wl, bl)

    return out[:B, :C]


# --------------------------- reference (pure JAX) -----------------------------

def simple_cnn_reference(input_ids, params, filter_sizes=(3, 4, 5),
                         matmul_dtype=jnp.bfloat16):
    """PyTorch-order reference: conv -> +bias -> ReLU -> max-pool -> concat -> linear."""
    x = jnp.take(params["embedding"], input_ids, axis=0).astype(matmul_dtype)
    feats = []
    for fs in filter_sizes:
        w = params[f"conv{fs}_w"].astype(matmul_dtype)   # (fs, E, F)
        b = params[f"conv{fs}_b"]                        # (1, F)
        L = x.shape[1] - fs + 1
        acc = sum(
            jnp.einsum("ble,ef->blf", x[:, k:k + L, :], w[k],
                       preferred_element_type=jnp.float32)
            for k in range(fs)) + b[None, :, :]
        acc = jnp.maximum(acc, 0.0)
        feats.append(jnp.max(acc, axis=1))
    feat = jnp.concatenate(feats, axis=1)
    return feat @ params["linear_w"] + params["linear_b"]


# ------------------------------- params ---------------------------------------

def make_params(key, vocab_size, embed_dim, num_filters, filter_sizes, num_classes):
    keys = jax.random.split(key, 3 + 2 * len(filter_sizes))
    params = {}
    params["embedding"] = jax.random.normal(
        keys[0], (vocab_size, embed_dim), jnp.float32)
    for i, fs in enumerate(filter_sizes):
        scale = 1.0 / jnp.sqrt(embed_dim * fs)
        params[f"conv{fs}_w"] = scale * jax.random.normal(
            keys[1 + 2 * i], (fs, embed_dim, num_filters), jnp.float32)
        params[f"conv{fs}_b"] = scale * jax.random.normal(
            keys[2 + 2 * i], (1, num_filters), jnp.float32)
    in_feat = len(filter_sizes) * num_filters
    scale = 1.0 / jnp.sqrt(in_feat)
    params["linear_w"] = scale * jax.random.normal(
        keys[-2], (in_feat, num_classes), jnp.float32)
    params["linear_b"] = scale * jax.random.normal(
        keys[-1], (1, num_classes), jnp.float32)
    return params


# ------------------------------- main -----------------------------------------

if __name__ == "__main__":
    # Small shapes consistent with the module's forward.
    VOCAB, EMBED, NFILT, CLASSES = 1000, 32, 32, 2
    FILTER_SIZES = (3, 4, 5)
    BATCH, SEQ = 2, 16

    key = jax.random.PRNGKey(0)
    pkey, dkey = jax.random.split(key)
    params = make_params(pkey, VOCAB, EMBED, NFILT, FILTER_SIZES, CLASSES)
    input_ids = jax.random.randint(dkey, (BATCH, SEQ), 0, VOCAB, dtype=jnp.int32)

    logits = simple_cnn_forward(input_ids, params, filter_sizes=FILTER_SIZES)
    logits = jax.block_until_ready(logits)
    assert logits.shape == (BATCH, CLASSES)

    # Tight check against a reference that uses the same bf16 matmul inputs /
    # f32 accumulation (guards the pool-before-bias/ReLU + slab-linear rewrites).
    ref_bf16 = simple_cnn_reference(input_ids, params, FILTER_SIZES,
                                    matmul_dtype=jnp.bfloat16)
    assert jnp.allclose(logits, ref_bf16, atol=1e-3, rtol=1e-3), (logits, ref_bf16)

    # Looser sanity check against the pure-f32 reference (bf16 cast error only).
    ref_f32 = simple_cnn_reference(input_ids, params, FILTER_SIZES,
                                   matmul_dtype=jnp.float32)
    assert jnp.allclose(logits, ref_f32, atol=5e-2, rtol=5e-2), (logits, ref_f32)

    print("KERNEL_OK")
</pallas_src>

<mosaic_0001>
module attributes {stable_mosaic.version = 11 : i64} {
  func.func @_cnn_classifier_kernel(%arg0: i32, %arg1: memref<8x16x32xbf16, #tpu.memory_space<vmem>>, %arg2: memref<32x384xbf16, #tpu.memory_space<vmem>>, %arg3: memref<1x32xf32, #tpu.memory_space<vmem>>, %arg4: memref<1x32xf32, #tpu.memory_space<vmem>>, %arg5: memref<1x32xf32, #tpu.memory_space<vmem>>, %arg6: memref<96x128xf32, #tpu.memory_space<vmem>>, %arg7: memref<1x128xf32, #tpu.memory_space<vmem>>, %arg8: memref<8x128xf32, #tpu.memory_space<vmem>>) attributes {dimension_semantics = [#tpu.dimension_semantics<parallel>], iteration_bounds = array<i64: 1>, scalar_prefetch = 0 : i64, scratch_operands = 0 : i64, tpu.core_type = #tpu.core_type<tc>, window_params = [{transform_indices = @transform_0, window_bounds = array<i64: 8, 16, 32>}, {pipeline_mode = #tpu.pipeline_mode<synchronous>, transform_indices = @transform_1, window_bounds = array<i64: 32, 384>}, {pipeline_mode = #tpu.pipeline_mode<synchronous>, transform_indices = @transform_2, window_bounds = array<i64: 1, 32>}, {pipeline_mode = #tpu.pipeline_mode<synchronous>, transform_indices = @transform_3, window_bounds = array<i64: 1, 32>}, {pipeline_mode = #tpu.pipeline_mode<synchronous>, transform_indices = @transform_4, window_bounds = array<i64: 1, 32>}, {pipeline_mode = #tpu.pipeline_mode<synchronous>, transform_indices = @transform_5, window_bounds = array<i64: 96, 128>}, {pipeline_mode = #tpu.pipeline_mode<synchronous>, transform_indices = @transform_6, window_bounds = array<i64: 1, 128>}, {transform_indices = @transform_7, window_bounds = array<i64: 8, 128>}]} {
    %c0 = arith.constant 0 : index
    %c0_0 = arith.constant 0 : index
    %c0_1 = arith.constant 0 : index
    %0 = vector.load %arg1[%c0, %c0_0, %c0_1] : memref<8x16x32xbf16, #tpu.memory_space<vmem>>, vector<8x16x32xbf16>
    %c0_2 = arith.constant 0 : index
    %c0_3 = arith.constant 0 : index
    %1 = vector.load %arg2[%c0_2, %c0_3] : memref<32x384xbf16, #tpu.memory_space<vmem>>, vector<32x384xbf16>
    %cst = arith.constant dense<0.000000e+00> : vector<8x16x384xf32>
    %2 = tpu.matmul %0, %1, %cst {dimension_numbers = #tpu.dot_dimension_numbers<[2], [0], [0, 1], [1], [0, 0, 0, 1, 1, 1], [], []>} : vector<8x16x32xbf16>, vector<32x384xbf16>, vector<8x16x384xf32> -> vector<8x16x384xf32>
    %3 = vector.extract_strided_slice %2 {offsets = [0, 0, 0], sizes = [8, 14, 32], strides = [1, 1, 1]} : vector<8x16x384xf32> to vector<8x14x32xf32>
    %4 = vector.extract_strided_slice %2 {offsets = [0, 1, 32], sizes = [8, 14, 32], strides = [1, 1, 1]} : vector<8x16x384xf32> to vector<8x14x32xf32>
    %5 = arith.addf %3, %4 : vector<8x14x32xf32>
    %6 = vector.extract_strided_slice %2 {offsets = [0, 2, 64], sizes = [8, 14, 32], strides = [1, 1, 1]} : vector<8x16x384xf32> to vector<8x14x32xf32>
    %7 = arith.addf %5, %6 : vector<8x14x32xf32>
    %cst_4 = arith.constant dense<0xFF800000> : vector<8x32xf32>
    %8 = vector.multi_reduction <maximumf>, %7, %cst_4 [1] : vector<8x14x32xf32> to vector<8x32xf32>
    %c0_5 = arith.constant 0 : index
    %c0_6 = arith.constant 0 : index
    %9 = vector.load %arg3[%c0_5, %c0_6] : memref<1x32xf32, #tpu.memory_space<vmem>>, vector<1x32xf32>
    %10 = vector.broadcast %9 : vector<1x32xf32> to vector<8x32xf32>
    %11 = arith.addf %8, %10 : vector<8x32xf32>
    %cst_7 = arith.constant 0.000000e+00 : f32
    %12 = vector.broadcast %cst_7 : f32 to vector<8x32xf32>
    %13 = arith.maximumf %11, %12 : vector<8x32xf32>
    %c0_8 = arith.constant 0 : index
    %c0_9 = arith.constant 0 : index
    %14 = vector.load %arg6[%c0_8, %c0_9] : memref<96x128xf32, #tpu.memory_space<vmem>>, vector<32x128xf32>
    %cst_10 = arith.constant dense<0.000000e+00> : vector<8x128xf32>
    %15 = tpu.matmul %13, %14, %cst_10 {dimension_numbers = #tpu.dot_dimension_numbers<[1], [0], [0], [1], [0, 0, 1, 1], [], []>} : vector<8x32xf32>, vector<32x128xf32>, vector<8x128xf32> -> vector<8x128xf32>
    %16 = vector.extract_strided_slice %2 {offsets = [0, 0, 96], sizes = [8, 13, 32], strides = [1, 1, 1]} : vector<8x16x384xf32> to vector<8x13x32xf32>
    %17 = vector.extract_strided_slice %2 {offsets = [0, 1, 128], sizes = [8, 13, 32], strides = [1, 1, 1]} : vector<8x16x384xf32> to vector<8x13x32xf32>
    %18 = arith.addf %16, %17 : vector<8x13x32xf32>
    %19 = vector.extract_strided_slice %2 {offsets = [0, 2, 160], sizes = [8, 13, 32], strides = [1, 1, 1]} : vector<8x16x384xf32> to vector<8x13x32xf32>
    %20 = arith.addf %18, %19 : vector<8x13x32xf32>
    %21 = vector.extract_strided_slice %2 {offsets = [0, 3, 192], sizes = [8, 13, 32], strides = [1, 1, 1]} : vector<8x16x384xf32> to vector<8x13x32xf32>
    %22 = arith.addf %20, %21 : vector<8x13x32xf32>
    %cst_11 = arith.constant dense<0xFF800000> : vector<8x32xf32>
    %23 = vector.multi_reduction <maximumf>, %22, %cst_11 [1] : vector<8x13x32xf32> to vector<8x32xf32>
    %c0_12 = arith.constant 0 : index
    %c0_13 = arith.constant 0 : index
    %24 = vector.load %arg4[%c0_12, %c0_13] : memref<1x32xf32, #tpu.memory_space<vmem>>, vector<1x32xf32>
    %25 = vector.broadcast %24 : vector<1x32xf32> to vector<8x32xf32>
    %26 = arith.addf %23, %25 : vector<8x32xf32>
    %cst_14 = arith.constant 0.000000e+00 : f32
    %27 = vector.broadcast %cst_14 : f32 to vector<8x32xf32>
    %28 = arith.maximumf %26, %27 : vector<8x32xf32>
    %c32 = arith.constant 32 : index
    %c0_15 = arith.constant 0 : index
    %29 = vector.load %arg6[%c32, %c0_15] : memref<96x128xf32, #tpu.memory_space<vmem>>, vector<32x128xf32>
    %cst_16 = arith.constant dense<0.000000e+00> : vector<8x128xf32>
    %30 = tpu.matmul %28, %29, %cst_16 {dimension_numbers = #tpu.dot_dimension_numbers<[1], [0], [0], [1], [0, 0, 1, 1], [], []>} : vector<8x32xf32>, vector<32x128xf32>, vector<8x128xf32> -> vector<8x128xf32>
    %31 = arith.addf %15, %30 : vector<8x128xf32>
    %32 = vector.extract_strided_slice %2 {offsets = [0, 0, 224], sizes = [8, 12, 32], strides = [1, 1, 1]} : vector<8x16x384xf32> to vector<8x12x32xf32>
    %33 = vector.extract_strided_slice %2 {offsets = [0, 1, 256], sizes = [8, 12, 32], strides = [1, 1, 1]} : vector<8x16x384xf32> to vector<8x12x32xf32>
    %34 = arith.addf %32, %33 : vector<8x12x32xf32>
    %35 = vector.extract_strided_slice %2 {offsets = [0, 2, 288], sizes = [8, 12, 32], strides = [1, 1, 1]} : vector<8x16x384xf32> to vector<8x12x32xf32>
    %36 = arith.addf %34, %35 : vector<8x12x32xf32>
    %37 = vector.extract_strided_slice %2 {offsets = [0, 3, 320], sizes = [8, 12, 32], strides = [1, 1, 1]} : vector<8x16x384xf32> to vector<8x12x32xf32>
    %38 = arith.addf %36, %37 : vector<8x12x32xf32>
    %39 = vector.extract_strided_slice %2 {offsets = [0, 4, 352], sizes = [8, 12, 32], strides = [1, 1, 1]} : vector<8x16x384xf32> to vector<8x12x32xf32>
    %40 = arith.addf %38, %39 : vector<8x12x32xf32>
    %cst_17 = arith.constant dense<0xFF800000> : vector<8x32xf32>
    %41 = vector.multi_reduction <maximumf>, %40, %cst_17 [1] : vector<8x12x32xf32> to vector<8x32xf32>
    %c0_18 = arith.constant 0 : index
    %c0_19 = arith.constant 0 : index
    %42 = vector.load %arg5[%c0_18, %c0_19] : memref<1x32xf32, #tpu.memory_space<vmem>>, vector<1x32xf32>
    %43 = vector.broadcast %42 : vector<1x32xf32> to vector<8x32xf32>
    %44 = arith.addf %41, %43 : vector<8x32xf32>
    %cst_20 = arith.constant 0.000000e+00 : f32
    %45 = vector.broadcast %cst_20 : f32 to vector<8x32xf32>
    %46 = arith.maximumf %44, %45 : vector<8x32xf32>
    %c64 = arith.constant 64 : index
    %c0_21 = arith.constant 0 : index
    %47 = vector.load %arg6[%c64, %c0_21] : memref<96x128xf32, #tpu.memory_space<vmem>>, vector<32x128xf32>
    %cst_22 = arith.constant dense<0.000000e+00> : vector<8x128xf32>
    %48 = tpu.matmul %46, %47, %cst_22 {dimension_numbers = #tpu.dot_dimension_numbers<[1], [0], [0], [1], [0, 0, 1, 1], [], []>} : vector<8x32xf32>, vector<32x128xf32>, vector<8x128xf32> -> vector<8x128xf32>
    %49 = arith.addf %31, %48 : vector<8x128xf32>
    %c0_23 = arith.constant 0 : index
    %c0_24 = arith.constant 0 : index
    %50 = vector.load %arg7[%c0_23, %c0_24] : memref<1x128xf32, #tpu.memory_space<vmem>>, vector<1x128xf32>
    %51 = vector.broadcast %50 : vector<1x128xf32> to vector<8x128xf32>
    %52 = arith.addf %49, %51 : vector<8x128xf32>
    %c0_25 = arith.constant 0 : index
    %c0_26 = arith.constant 0 : index
    %53 = vector.load %arg8[%c0_25, %c0_26] : memref<8x128xf32, #tpu.memory_space<vmem>>, vector<8x128xf32>
    tpu.vector_store %arg8[%c0_25, %c0_26], %52 {strides = array<i32>} : memref<8x128xf32, #tpu.memory_space<vmem>>, vector<8x128xf32>,
    return
  }
  func.func @transform_0(%arg0: i32) -> (i32, i32, i32) {
    %c0_i32 = arith.constant 0 : i32
    %c0_i32_0 = arith.constant 0 : i32
    %c0_i32_1 = arith.constant 0 : i32
    return %arg0, %c0_i32, %c0_i32_0 : i32, i32, i32
  }
  func.func @transform_1(%arg0: i32) -> (i32, i32) {
    %c0_i32 = arith.constant 0 : i32
    %c0_i32_0 = arith.constant 0 : i32
    %c0_i32_1 = arith.constant 0 : i32
    return %c0_i32, %c0_i32_0 : i32, i32
  }
  func.func @transform_2(%arg0: i32) -> (i32, i32) {
    %c0_i32 = arith.constant 0 : i32
    %c0_i32_0 = arith.constant 0 : i32
    %c0_i32_1 = arith.constant 0 : i32
    return %c0_i32, %c0_i32_0 : i32, i32
  }
  func.func @transform_3(%arg0: i32) -> (i32, i32) {
    %c0_i32 = arith.constant 0 : i32
    %c0_i32_0 = arith.constant 0 : i32
    %c0_i32_1 = arith.constant 0 : i32
    return %c0_i32, %c0_i32_0 : i32, i32
  }
  func.func @transform_4(%arg0: i32) -> (i32, i32) {
    %c0_i32 = arith.constant 0 : i32
    %c0_i32_0 = arith.constant 0 : i32
    %c0_i32_1 = arith.constant 0 : i32
    return %c0_i32, %c0_i32_0 : i32, i32
  }
  func.func @transform_5(%arg0: i32) -> (i32, i32) {
    %c0_i32 = arith.constant 0 : i32
    %c0_i32_0 = arith.constant 0 : i32
    %c0_i32_1 = arith.constant 0 : i32
    return %c0_i32, %c0_i32_0 : i32, i32
  }
  func.func @transform_6(%arg0: i32) -> (i32, i32) {
    %c0_i32 = arith.constant 0 : i32
    %c0_i32_0 = arith.constant 0 : i32
    %c0_i32_1 = arith.constant 0 : i32
    return %c0_i32, %c0_i32_0 : i32, i32
  }
  func.func @transform_7(%arg0: i32) -> (i32, i32) {
    %c0_i32 = arith.constant 0 : i32
    %c0_i32_0 = arith.constant 0 : i32
    return %arg0, %c0_i32 : i32, i32
  }
}

</mosaic_0001>

<bundles_post_ra>
// kernel: tpu_custom_call.1
= control target key start
LH: loop header
LB: loop body
LE: loop exit
PB: predicated region body
PF: predicated region fallthrough
CT: control target
= control target key end

     0   :  { %12 = vsyncpa [#allocation3], 0  ;;  %s3364_s0 = inlined_call_operand.hbm [shape: bf16[8,16,32], index: 0, kind: input, shape index: {}]   ;;  %s3365_s1 = inlined_call_operand.hbm [shape: bf16[32,384], index: 1, kind: input, shape index: {}]   ;;  %s3366_s2 = inlined_call_operand.vmem [shape: f32[1,32], index: 2, kind: input, shape index: {}]   ;;  %s3367_s3 = inlined_call_operand.vmem [shape: f32[1,32], index: 3, kind: input, shape index: {}]   ;;  %s3368_s4 = inlined_call_operand.vmem [shape: f32[1,32], index: 4, kind: input, shape index: {}]   ;;  %s3369_s5 = inlined_call_operand.hbm [shape: f32[96,128], index: 5, kind: input, shape index: {}]   ;;  %s3370_s6 = inlined_call_operand.vmem [shape: f32[1,128], index: 6, kind: input, shape index: {}]   ;;  %s3371_s7 = inlined_call_operand.hbm [shape: f32[8,128], index: 7, kind: output, shape index: {}]  }
   0x1   :  { %13 = vsyncpa [#allocation6], 0 }
   0x2   :  { %14 = vsyncpa [#allocation4], 0  ;;  %s2095_s24 = smov [#allocation5]   ;;  %s2001_s28 = scalar_lea.hbm %s3365_s1, 768 }
   0x3   :  { %s32_s25 = sshll.u32 %s2095_s24, 4  ;;  %p2002_p0 = scmp.ne.s32.totalorder %s3365_s1, %s2001_s28  ;;  %s33_s25 = int_to_ptr.vmem [resolvable:$true] %s32_s25 }
   0x4   :  { %p2005_p1 = scmp.lt.u32.totalorder %s2001_s28, %s3365_s1 }
   0x6   :  { %p2007_p2 = pnand %p2005_p1, %p2002_p0 }
   0x8   :  { %2010 = shalt.err (!%p2007_p2)
}
   0x9   :  { %s2011_s10 = scalar_lea.vmem %s33_s25, 768  ;;  %p2016_p4 = scmp.lt.s32.totalorder %s33_s25, %s33_s25 }
   0xa   :  { %p2012_p3 = scmp.ne.s32.totalorder %s33_s25, %s2011_s10  ;;  %p2017_p5 = scmp.lt.s32.totalorder %s2011_s10, %s2011_s10 }
   0xc   :  { %p2018_p6 = por %p2017_p5, %p2016_p4 }
   0xe   :  { %p2019_p7 = pnand %p2018_p6, %p2012_p3 }
  0x10   :  { %2022 = shalt.err (!%p2019_p7)
}
  0x11   :  { %s2096_s11 = smov 192   ;;  %s2097_s12 = smov 12  }
  0x12   :  { %38 = dma.hbm_to_vmem [thread:$0]  %s3365_s1, 768, %s33_s25, [#allocation6], %s2096_s11, %s2096_s11, %s2097_s12  }
  0x13   :  { %s2098_s15 = smov [#allocation2]   ;;  %s2023_s19 = scalar_lea.hbm %s3364_s0, 1024 }
  0x14   :  { %s20_s16 = sshll.u32 %s2098_s15, 4  ;;  %p2024_p8 = scmp.ne.s32.totalorder %s3364_s0, %s2023_s19  ;;  %s21_s16 = int_to_ptr.vmem [resolvable:$true] %s20_s16 }
  0x15   :  { %p2027_p9 = scmp.lt.u32.totalorder %s2023_s19, %s3364_s0 }
  0x17   :  { %p2029_p10 = pnand %p2027_p9, %p2024_p8 }
  0x19   :  { %2032 = shalt.err (!%p2029_p10)
}
  0x1a   :  { %s2033_s24 = scalar_lea.vmem %s21_s16, 1024  ;;  %p2038_p12 = scmp.lt.s32.totalorder %s21_s16, %s21_s16 }
  0x1b   :  { %p2034_p11 = scmp.ne.s32.totalorder %s21_s16, %s2033_s24  ;;  %p2039_p13 = scmp.lt.s32.totalorder %s2033_s24, %s2033_s24 }
  0x1d   :  { %p2040_p0 = por %p2039_p13, %p2038_p12 }
  0x1f   :  { %p2041_p1 = pnand %p2040_p0, %p2034_p11 }
  0x21   :  { %2044 = shalt.err (!%p2041_p1)
}
  0x22   :  { %s2099_s1 = smov 64   ;;  %s2100_s25 = smov 4  }
  0x23   :  { %26 = dma.hbm_to_vmem [thread:$0]  %s3364_s0, 1024, %s21_s16, [#allocation3], %s2099_s1, %s2099_s1, %s2100_s25  }
  0x24   :  { %s2101_s28 = smov [#allocation7]   ;;  %s2045_s9 = scalar_lea.hbm %s3369_s5, 1536 }
  0x25   :  { %s50_s29 = sshll.u32 %s2101_s28, 4  ;;  %p2046_p2 = scmp.ne.s32.totalorder %s3369_s5, %s2045_s9  ;;  %s51_s29 = int_to_ptr.vmem [resolvable:$true] %s50_s29 }
  0x26   :  { %p2049_p3 = scmp.lt.u32.totalorder %s2045_s9, %s3369_s5 }
  0x28   :  { %p2051_p4 = pnand %p2049_p3, %p2046_p2 }
  0x2a   :  { %2054 = shalt.err (!%p2051_p4)
}
  0x2b   :  { %s2055_s14 = scalar_lea.vmem %s51_s29, 1536  ;;  %p2060_p6 = scmp.lt.s32.totalorder %s51_s29, %s51_s29 }
  0x2c   :  { %p2056_p5 = scmp.ne.s32.totalorder %s51_s29, %s2055_s14  ;;  %p2061_p7 = scmp.lt.s32.totalorder %s2055_s14, %s2055_s14 }
  0x2e   :  { %p2062_p8 = por %p2061_p7, %p2060_p6 }
  0x30   :  { %p2063_p9 = pnand %p2062_p8, %p2056_p5 }
  0x32   :  { %2066 = shalt.err (!%p2063_p9)
}
  0x33   :  { %s2102_s0 = smov 128   ;;  %s2103_s15 = smov 8  }
  0x34   :  { %56 = dma.hbm_to_vmem [thread:$0]  %s3369_s5, 1536, %s51_s29, [#allocation6], %s2102_s0, %s2102_s0, %s2103_s15  }
  0x35   :  { %2089 = dma.done.wait [#allocation3], 1024  }
  0x36   :  { %2090 = vsyncadd [#allocation3], 4294966272 }
  0x37   :  { %2091 = dma.done.wait [#allocation6], 2304  }
  0x38   :  { %2092 = vsyncadd [#allocation6], 4294964992  ;;  %v2104_v0 = vmov 0   ;;  %vm165_vm0 = vcmask 261120   ;;  %v1985_v1 = vld [vmem:[#allocation5 + $0x8] ss:$12 sps:$4 sm:$0xff]  }
  0x39   :  { %222 = vmatprep.mubr.bf16.mxu0 %v2104_v0  ;;  %v1986_v2 = vld [vmem:[#allocation5 + $0x20] ss:$12 sps:$4 sm:$0xff]   ;;  %1898 = vmatprep.subr.bf16.mxu1 %v1985_v1  ;;  %v1988_v4 = vld [vmem:[#allocation5 + $0x4] ss:$12 sps:$4 sm:$0xff]   ;;  %v1992_v7 = vld [vmem:[#allocation5 + $0x1c] ss:$12 sps:$4 sm:$0xff]  }
  0x3a   :  { %v1987_v3 = vld [vmem:[#allocation2] sm:$0xff]   ;;  %1899 = vmatpush3.bf16.msra.mxu1 %v1985_v1  ;;  %v1990_v5 = vld [vmem:[#allocation2 + $0x8] sm:$0xff]   ;;  %190 = vmatprep.subr.bf16.mxu0 %v1988_v4  ;;  %v1995_v9 = vld [vmem:[#allocation2 + $0x10] sm:$0xff]   ;;  %s2105_s19 = smov 96   ;;  %vm416_vm1 = vcmask 1046528   ;;  %vm505_vm2 = vcmask 1045504  }
  0x3b   :  { %1900 = vmatprep.subr.bf16.mxu1 %v1986_v2  ;;  %1902 = vmatprep.mubr.msk.bf16.mxu1 %vm165_vm0, %v1987_v3  ;;  %v1991_v6 = vld [vmem:[#allocation5] ss:$12 sps:$4 sm:$0xff]   ;;  %v1994_v8 = vld [vmem:[#allocation5 + $0x18] ss:$12 sps:$4 sm:$0xff]   ;;  %v1999_v13 = vld [vmem:[#allocation2 + $0x30] sm:$0xff]   ;;  %vm886_vm3 = vcmask 1044480  }
  0x3c   :  { %191 = vmatpush1.bf16.msra.mxu0 %v1991_v6  ;;  %v1996_v10 = vld [vmem:[#allocation2 + $0x18] sm:$0xff]   ;;  %v1997_v11 = vld [vmem:[#allocation2 + $0x20] sm:$0xff]   ;;  %v1998_v12 = vld [vmem:[#allocation2 + $0x28] sm:$0xff]   ;;  %vm1555_vm4 = vcmask 1043456   ;;  %vm1613_vm5 = vcmask 1044224   ;;  %vm975_vm6 = vcmask 1048320  }
  0x3d   :  { %192 = vmatprep.subr.bf16.mxu0 %v1992_v7  ;;  %v2000_v14 = vld [vmem:[#allocation2 + $0x38] sm:$0xff]   ;;  %v1867_v15 = vld [vmem:[%s3367_s3] ss:$0 sm:$0xff]  ;;  %s2106_s3 = smov 32   ;;  %vm977_vm7 = vcmask 1045248   ;;  %vm1087_vm8 = vcmask 1041409  }
  0x3e   :  { %1901 = vmatpush3.bf16.msra.mxu1 %v1986_v2  ;;  %1055 = vrot.lane.b32.xlu0 %v1867_v15, %s2105_s19  ;;  %vm1090_vm9 = vcmask 1042434   ;;  %vm2108_vm10 = vmmov 0   ;;  %vm1093_vm11 = vcmask 1043459   ;;  %vm1096_vm12 = vcmask 1044484   ;;  %s2110_s24 = smov [#allocation8]  }
  0x3f   :  { %vm1099_vm13 = vcmask 1045509   ;;  %vm1102_vm14 = vcmask 1046534   ;;  %vm1105_vm15 = vcmask 1047559  }
  0x40   :  { %193 = vmatpush1.bf16.msra.mxu0 %v1994_v8 }
  0x41   :  { %1903 = vmatmul.mubr.msk.bf16.vlgmr.msra.gmra.mrb[0].mxu1 %vm165_vm0, %v1990_v5 }
  0x42   :  { %1906 = vmatprep.mubr.msk.bf16.mxu1 %vm165_vm0, %v1995_v9 }
  0x43   :  { %1850 = vmatmul.mubr.msk.bf16.vlgmr.msra.gmra.mrb[0].mxu0 %vm165_vm0, %v1987_v3 }
  0x44   :  { %232 = vmatprep.mubr.bf16.mxu0 %v2104_v0 }
  0x49   :  { %1907 = vmatmul.mubr.msk.bf16.gmra.mrb[4].mxu1 %vm165_vm0, %v1996_v10 }
  0x4a   :  { %1910 = vmatprep.mubr.msk.bf16.mxu1 %vm165_vm0, %v1997_v11 }
  0x4b   :  { %1851 = vmatmul.mubr.msk.bf16.gmra.mrb[4].mxu0 %vm165_vm0, %v1990_v5 }
  0x4c   :  { %242 = vmatprep.mubr.bf16.mxu0 %v2104_v0 }
  0x51   :  { %1911 = vmatmul.mubr.msk.bf16.gmra.mrb[8].mxu1 %vm165_vm0, %v1998_v12 }
  0x52   :  { %1914 = vmatprep.mubr.msk.bf16.mxu1 %vm165_vm0, %v1999_v13 }
  0x53   :  { %1852 = vmatmul.mubr.msk.bf16.gmra.mrb[8].mxu0 %vm165_vm0, %v1995_v9 }
  0x54   :  { %252 = vmatprep.mubr.bf16.mxu0 %v2104_v0 }
  0x59   :  { %1915 = vmatmul.mubr.msk.bf16.gmra.mrb[12].mxu1 %vm165_vm0, %v2000_v14 }
  0x5b   :  { %1853 = vmatmul.mubr.msk.bf16.gmra.mrb[12].mxu0 %vm165_vm0, %v1996_v10 }
  0x5c   :  { %262 = vmatprep.mubr.bf16.mxu0 %v2104_v0 }
  0x63   :  { %1854 = vmatmul.mubr.msk.bf16.gmra.mrb[16].mxu0 %vm165_vm0, %v1997_v11 }
  0x64   :  { %272 = vmatprep.mubr.bf16.mxu0 %v2104_v0 }
  0x6b   :  { %1855 = vmatmul.mubr.msk.bf16.gmra.mrb[20].mxu0 %vm165_vm0, %v1998_v12 }
  0x6c   :  { %282 = vmatprep.mubr.bf16.mxu0 %v2104_v0 }
  0x73   :  { %1856 = vmatmul.mubr.msk.bf16.gmra.mrb[24].mxu0 %vm165_vm0, %v1999_v13 }
  0x74   :  { %292 = vmatprep.mubr.bf16.mxu0 %v2104_v0 }
  0x7b   :  { %1857 = vmatmul.mubr.msk.bf16.gmra.mrb[28].mxu0 %vm165_vm0, %v2000_v14 }
 0x114   :  { %v2209_v16 = vpop.f32.mrb[0].mxu1 }
 0x115   :  { %v2211_v17 = vpop.f32.mrb[1].mxu1  ;;  %v1294_v18 = vrot.slane %v2209_v16, 1  ;;  %v1470_v19 = vrot.slane %v2209_v16, 3  ;;  %v1382_v24 = vrot.slane %v2209_v16, 2 }
 0x116   :  { %v2215_v20 = vpop.f32.mrb[2].mxu1  ;;  %v1291_v26 = vrot.slane %v2211_v17, 1  ;;  %v2224_v27 = vpop.f32.mrb[0].mxu0  ;;  %v1467_v31 = vrot.slane %v2211_v17, 3  ;;  %v1379_v35 = vrot.slane %v2211_v17, 2 }
 0x117   :  { %3426 = vst [vmem:[#allocation12_spill] sm:$0xff] %v2215_v20  ;;  %v2217_v21 = vpop.f32.mrb[3].mxu1  ;;  %v1295_v22 = vrot.slane %v2215_v20, 1  ;;  %v1383_v23 = vrot.slane %v2215_v20, 2  ;;  %v1471_v25 = vrot.slane %v2215_v20, 3  ;;  %v2232_v33 = vpop.f32.mrb[1].mxu0 }
 0x118   :  { %3427 = vst [vmem:[#allocation13_spill] sm:$0xff] %v2217_v21  ;;  %v1292_v28 = vrot.slane %v2217_v21, 1  ;;  %v3390_v29 = vrot.slane %v2217_v21, 2  ;;  %v3385_v30 = vrot.slane %v2217_v21, 3  ;;  %3428 = vst [vmem:[#allocation14_spill] sm:$0xff] %v2232_v33  ;;  %v710_v36 = vrot.slane %v2232_v33, 1 }
 0x119   :  { %1321 = vrot.lane.b32.xlu1 %v1295_v22, %s2105_s19  ;;  %v1296_v32 = vsel %vm416_vm1, %v1294_v18, %v1295_v22  ;;  %v1384_v34 = vsel %vm505_vm2, %v1382_v24, %v1383_v23  ;;  %v887_v37 = vrot.slane %v2232_v33, 3  ;;  %v2239_v38 = vpop.f32.mrb[2].mxu0  ;;  %v1472_v39 = vsel %vm886_vm3, %v1470_v19, %v1471_v25 }
 0x11a   :  { %1319 = vrot.lane.b32.xlu0 %v1296_v32, %s2105_s19  ;;  %v798_v40 = vrot.slane %v2232_v33, 2  ;;  %v2245_v43 = vpop.f32.mrb[3].mxu0  ;;  %v2250_v44 = vsel %vm416_vm1, %v1291_v26, %v1292_v28  ;;  %v2255_v45 = vsel %vm505_vm2, %v1379_v35, %v3390_v29  ;;  %v2265_v50 = vsel %vm886_vm3, %v1467_v31, %v3385_v30 }
 0x11b   :  { %3429 = vst [vmem:[#allocation15_spill] sm:$0xff] %v2245_v43  ;;  %v711_v46 = vrot.slane %v2245_v43, 1  ;;  %v799_v47 = vrot.slane %v2245_v43, 2  ;;  %v888_v48 = vrot.slane %v2245_v43, 3  ;;  %v3393_v55 = vrot.slane %v2215_v20, 4 }
 0x11c   :  { %v2260_v49 = vpop.f32.mrb[4].mxu1 }
 0x11d   :  { %1409 = vrot.lane.b32.xlu1 %v1383_v23, %s2099_s1  ;;  %v1300_v52 = vrot.slane %v2260_v49, 1  ;;  %v2270_v53 = vpop.f32.mrb[5].mxu1  ;;  %v1388_v54 = vrot.slane %v2260_v49, 2  ;;  %v712_v56 = vsel %vm416_vm1, %v710_v36, %v711_v46  ;;  %v2279_v57 = vsel %vm505_vm2, %v798_v40, %v799_v47 }
 0x11e   :  { %1407 = vrot.lane.b32.xlu0 %v1384_v34, %s2099_s1  ;;  %v2284_v58 = vsel %vm886_vm3, %v887_v37, %v888_v48  ;;  %v1476_v59 = vrot.slane %v2260_v49, 3  ;;  %v2287_v60 = vpop.f32.mrb[6].mxu1  ;;  %v1297_v62 = vrot.slane %v2270_v53, 1  ;;  %v1473_v2 = vrot.slane %v2270_v53, 3  ;;  %v2296_v3 = vpop.f32.mrb[4].mxu0 }
 0x11f   :  { %v2291_v63 = vpop.f32.mrb[7].mxu1  ;;  %v3380_v0 = vrot.slane %v2287_v60, 1  ;;  %v3377_v1 = vrot.slane %v2287_v60, 2  ;;  %v3376_v4 = vrot.slane %v2287_v60, 3  ;;  %v2303_v8 = vpop.f32.mrb[5].mxu0 }
 0x120   :  { %v3374_v5 = vrot.slane %v2291_v63, 1  ;;  %v3372_v6 = vrot.slane %v2291_v63, 3  ;;  %v3373_v11 = vrot.slane %v2291_v63, 2  ;;  %v713_v13 = vrot.slane %v2303_v8, 1  ;;  %v2319_v14 = vpop.f32.mrb[6].mxu0 }
 0x121   :  { %1497 = vrot.lane.b32.xlu1 %v1471_v25, %s2106_s3  ;;  %v2308_v9 = vsel %vm416_vm1, %v1300_v52, %v3380_v0  ;;  %v2313_v10 = vsel %vm505_vm2, %v1388_v54, %v3377_v1  ;;  %v2324_v15 = vsel %vm886_vm3, %v1476_v59, %v3376_v4  ;;  %v801_v18 = vrot.slane %v2303_v8, 2  ;;  %v2329_v23 = vpop.f32.mrb[7].mxu0 }
 0x122   :  { %1495 = vrot.lane.b32.xlu0 %v1472_v39, %s2106_s3  ;;  %v890_v22 = vrot.slane %v2303_v8, 3  ;;  %v2334_v24 = vsel %vm416_vm1, %v1297_v62, %v3374_v5  ;;  %v1385_v25 = vrot.slane %v2270_v53, 2  ;;  %v3379_v26 = vrot.slane %v2329_v23, 1 }
 0x123   :  { %v3375_v31 = vrot.slane %v2329_v23, 2  ;;  %v3378_v32 = vrot.slane %v2329_v23, 3  ;;  %v2345_v35 = vsel %vm886_vm3, %v1473_v2, %v3372_v6 }
 0x124   :  { %v2340_v34 = vpop.f32.mrb[8].mxu1  ;;  %v2356_v52 = vsel %vm505_vm2, %v1385_v25, %v3373_v11 }
 0x125   :  { %736 = vrot.lane.b32.xlu1 %v711_v46, %s2105_s19  ;;  %v1306_v39 = vrot.slane %v2340_v34, 1  ;;  %v2351_v40 = vpop.f32.mrb[9].mxu1  ;;  %v2363_v46 = vsel %vm416_vm1, %v713_v13, %v3379_v26  ;;  %v2368_v59 = vsel %vm505_vm2, %v801_v18, %v3375_v31  ;;  %v1482_v62 = vrot.slane %v2340_v34, 3 }
 0x126   :  { %734 = vrot.lane.b32.xlu0 %v712_v56, %s2105_s19  ;;  %v2371_v2 = vpop.f32.mrb[10].mxu1  ;;  %v1303_v25 = vrot.slane %v2351_v40, 1  ;;  %v2377_v56 = vsel %vm886_vm3, %v890_v22, %v3378_v32  ;;  %v2384_v5 = vpop.f32.mrb[8].mxu0  ;;  %v1394_v4 = vrot.slane %v2340_v34, 2  ;;  %v1479_v32 = vrot.slane %v2351_v40, 3 }
 0x127   :  { %v2379_v6 = vpop.f32.mrb[11].mxu1  ;;  %v3381_v13 = vrot.slane %v2371_v2, 1  ;;  %v3382_v11 = vrot.slane %v2371_v2, 2  ;;  %3430 = vst [vmem:[#allocation16_spill] sm:$0xff] %v2384_v5  ;;  %v3384_v31 = vrot.slane %v2371_v2, 3  ;;  %v2394_v26 = vpop.f32.mrb[9].mxu0 }
 0x128   :  { %v3383_v1 = vrot.slane %v2379_v6, 1  ;;  %3431 = vst [vmem:[#allocation17_spill] sm:$0xff] %v2394_v26  ;;  %v3386_v12 = vrot.slane %v2379_v6, 3  ;;  %v2406_v54 = vpop.f32.mrb[10].mxu0  ;;  %v804_v51 = vrot.slane %v2394_v26, 2  ;;  %v3389_v7 = vrot.slane %v2379_v6, 2 }
 0x129   :  { %824 = vrot.lane.b32.xlu1 %v799_v47, %s2099_s1  ;;  %v2399_v61 = vsel %vm416_vm1, %v1306_v39, %v3381_v13  ;;  %v893_v47 = vrot.slane %v2394_v26, 3  ;;  %v2411_v22 = vsel %vm505_vm2, %v1394_v4, %v3382_v11  ;;  %v716_v39 = vrot.slane %v2394_v26, 1  ;;  %v2415_v13 = vpop.f32.mrb[11].mxu0 }
 0x12a   :  { %822 = vrot.lane.b32.xlu0 %v2279_v57, %s2099_s1  ;;  %v2421_v57 = vsel %vm416_vm1, %v1303_v25, %v3383_v1  ;;  %v2426_v0 = vsel %vm886_vm3, %v1482_v62, %v3384_v31  ;;  %v3392_v4 = vrot.slane %v2415_v13, 1  ;;  %v3387_v11 = vrot.slane %v2415_v13, 2 }
 0x12b   :  { %v3388_v36 = vrot.slane %v2415_v13, 3  ;;  %v1391_v42 = vrot.slane %v2351_v40, 2  ;;  %v423_v1 = vrot.slane %v2384_v5, 1  ;;  %v2445_v30 = vsel %vm886_vm3, %v1479_v32, %v3386_v12 }
 0x12c   :  { %v2431_v19 = vpop.f32.mrb[12].mxu1  ;;  %v2480_v32 = vsel %vm416_vm1, %v716_v39, %v3392_v4  ;;  %v3434_v26 = vrot.slane %v2209_v16, 4 }
 0x12d   :  { %913 = vrot.lane.b32.xlu1 %v888_v48, %s2106_s3  ;;  %v2440_v31 = vpop.f32.mrb[13].mxu1  ;;  %v2453_v48 = vsel %vm505_vm2, %v804_v51, %v3387_v11  ;;  %v2458_v25 = vsel %vm886_vm3, %v893_v47, %v3388_v36  ;;  %v1312_v62 = vrot.slane %v2431_v19, 1  ;;  %v2469_v51 = vsel %vm505_vm2, %v1391_v42, %v3389_v7 }
 0x12e   :  { %911 = vrot.lane.b32.xlu0 %v2284_v58, %s2106_s3  ;;  %v2461_v18 = vpop.f32.mrb[14].mxu1  ;;  %v1488_v58 = vrot.slane %v2431_v19, 3  ;;  %v1309_v47 = vrot.slane %v2440_v31, 1  ;;  %v1485_v36 = vrot.slane %v2440_v31, 3  ;;  %v2475_v37 = vpop.f32.mrb[12].mxu0  ;;  %v2496_v39 = vsel %vm1555_vm4, %v3434_v26, %v3393_v55 }
 0x12f   :  { %v2471_v11 = vpop.f32.mrb[15].mxu1  ;;  %3432 = vst [vmem:[#allocation18_spill] sm:$0xff] %v2475_v37  ;;  %v3397_v12 = vrot.slane %v2461_v18, 1  ;;  %v2488_v29 = vpop.f32.mrb[13].mxu0  ;;  %3435 = vst [vmem:[#allocation20_spill] sm:$0xff] %v2496_v39  ;;  %v426_v16 = vrot.slane %v2475_v37, 1 }
 0x130   :  { %3433 = vst [vmem:[#allocation19_spill] sm:$0xff] %v2488_v29  ;;  %v896_v4 = vrot.slane %v2488_v29, 3  ;;  %v2502_v42 = vpop.f32.mrb[14].mxu0  ;;  %v3438_v55 = vrot.slane %v2471_v11, 1  ;;  %v3440_v33 = vrot.slane %v2461_v18, 3  ;;  %v1397_v20 = vrot.slane %v2440_v31, 2 }
 0x131   :  { %1317 = vrot.lane.b32.xlu1 %v1292_v28, %s2105_s19  ;;  %v719_v28 = vrot.slane %v2488_v29, 1  ;;  %3436 = vst [vmem:[#allocation21_spill] sm:$0xff] %v2502_v42  ;;  %v2507_v41 = vsel %vm416_vm1, %v1312_v62, %v3397_v12  ;;  %v2511_v26 = vpop.f32.mrb[15].mxu0  ;;  %v1400_v62 = vrot.slane %v2431_v19, 2  ;;  %v3437_v12 = vrot.slane %v2217_v21, 2 }
 0x132   :  { %1315 = vrot.lane.b32.xlu0 %v2250_v44, %s2105_s19  ;;  %v807_v44 = vrot.slane %v2488_v29, 2  ;;  %v2527_v29 = vsel %vm416_vm1, %v1309_v47, %v3438_v55  ;;  %v2532_v43 = vsel %vm886_vm3, %v1488_v58, %v3440_v33  ;;  %v3442_v39 = vrot.slane %v2511_v26, 1 }
 0x133   :  { %3439 = vst [vmem:[#allocation22_spill] sm:$0xff] %v2527_v29  ;;  %3441 = vst [vmem:[#allocation23_spill] sm:$0xff] %v2532_v43  ;;  %v3443_v7 = vrot.slane %v2511_v26, 2  ;;  %v3444_v47 = vrot.slane %v2511_v26, 3  ;;  %v3445_v58 = vrot.slane %v2461_v18, 2 }
 0x135   :  { %1405 = vrot.lane.b32.xlu1 %v3437_v12, %s2099_s1  ;;  %v2540_v12 = vsel %vm416_vm1, %v719_v28, %v3442_v39  ;;  %v2545_v55 = vsel %vm505_vm2, %v807_v44, %v3443_v7  ;;  %v2550_v33 = vsel %vm886_vm3, %v896_v4, %v3444_v47  ;;  %v2555_v43 = vsel %vm505_vm2, %v1400_v62, %v3445_v58 }
 0x136   :  { %1403 = vrot.lane.b32.xlu0 %v2255_v45, %s2099_s1  ;;  %v3446_v45 = vrot.slane %v2471_v11, 2  ;;  %v3447_v28 = vrot.slane %v2471_v11, 3  ;;  %v515_v47 = vrot.slane %v2475_v37, 2  ;;  %v2570_v29 = vpop.f32.mrb[16].mxu0  ;;  %v3450_v58 = vrot.slane %v2319_v14, 1 }
 0x137   :  { %3449 = vst [vmem:[#allocation25_spill] sm:$0xff] %v2570_v29  ;;  %v3455_v4 = vrot.slane %v2217_v21, 3  ;;  %v2589_v37 = vpop.f32.mrb[17].mxu0  ;;  %v3457_v62 = vrot.slane %v2217_v21, 4 }
 0x138   :  { %v2560_v39 = vsel %vm505_vm2, %v1397_v20, %v3446_v45  ;;  %v2565_v7 = vsel %vm886_vm3, %v1485_v36, %v3447_v28  ;;  %v3451_v20 = vrot.slane %v2296_v3, 1  ;;  %v3453_v36 = vrot.slane %v2406_v54, 1  ;;  %3456 = vst [vmem:[#allocation28_spill] sm:$0xff] %v2589_v37 }
 0x139   :  { %3448 = vst [vmem:[#allocation24_spill] sm:$0xff] %v2565_v7  ;;  %1493 = vrot.lane.b32.xlu1 %v3455_v4, %s2106_s3  ;;  %v3458_v7 = vrot.slane %v2211_v17, 4  ;;  %v722_v44 = vrot.slane %v2589_v37, 1  ;;  %v2610_v17 = vpop.f32.mrb[18].mxu0  ;;  %v3477_v4 = vrot.slane %v2406_v54, 2 }
 0x13a   :  { %v2578_v45 = vsel %vm416_vm1, %v3451_v20, %v3450_v58  ;;  %v2583_v28 = vsel %vm416_vm1, %v423_v1, %v3453_v36  ;;  %v3460_v20 = vrot.slane %v2287_v60, 4  ;;  %v3461_v1 = vrot.slane %v2260_v49, 4  ;;  %1491 = vrot.lane.b32.xlu0 %v2265_v50, %s2106_s3  ;;  %3463 = vst [vmem:[#allocation31_spill] sm:$0xff] %v2610_v17  ;;  %v2622_v50 = vpop.f32.mrb[19].mxu0 }
 0x13b   :  { %3452 = vst [vmem:[#allocation26_spill] sm:$0xff] %v2578_v45  ;;  %3454 = vst [vmem:[#allocation27_spill] sm:$0xff] %v2583_v28  ;;  %v2596_v58 = vsel %vm1555_vm4, %v3458_v7, %v3457_v62  ;;  %v899_v28 = vrot.slane %v2589_v37, 3  ;;  %v810_v7 = vrot.slane %v2589_v37, 2  ;;  %v3464_v62 = vrot.slane %v2291_v63, 4 }
 0x13c   :  { %3459 = vst [vmem:[#allocation29_spill] sm:$0xff] %v2596_v58  ;;  %v2603_v36 = vsel %vm1555_vm4, %v3461_v1, %v3460_v20  ;;  %v3465_v49 = vrot.slane %v2270_v53, 4  ;;  %v3467_v45 = vrot.slane %v2239_v38, 1  ;;  %v3469_v37 = vrot.slane %v2502_v42, 1 }
 0x13d   :  { %3462 = vst [vmem:[#allocation30_spill] sm:$0xff] %v2603_v36  ;;  %v3468_v36 = vrot.slane %v2224_v27, 1  ;;  %v3470_v1 = vrot.slane %v2319_v14, 2 }
 0x13e   :  { %v2618_v20 = vsel %vm1555_vm4, %v3465_v49, %v3464_v62  ;;  %v2634_v53 = vsel %vm416_vm1, %v426_v16, %v3469_v37  ;;  %v3474_v16 = vrot.slane %v2371_v2, 4  ;;  %v3478_v62 = vrot.slane %v2384_v5, 2 }
 0x13f   :  { %3466 = vst [vmem:[#allocation32_spill] sm:$0xff] %v2618_v20  ;;  %v2629_v58 = vsel %vm416_vm1, %v3468_v36, %v3467_v45  ;;  %v3471_v20 = vrot.slane %v2296_v3, 2  ;;  %v3473_v45 = vrot.slane %v2287_v60, 1  ;;  %v3475_v36 = vrot.slane %v2340_v34, 4 }
 0x140   :  { %v3483_v34 = vrot.slane %v2329_v23, 1  ;;  %v3485_v5 = vrot.slane %v2622_v50, 2 }
 0x141   :  { %v2644_v21 = vsel %vm505_vm2, %v3471_v20, %v3470_v1  ;;  %1329 = vrot.lane.b32.xlu1 %v3473_v45, %s2105_s19  ;;  %v2655_v49 = vsel %vm1555_vm4, %v3475_v36, %v3474_v16  ;;  %v2662_v20 = vsel %vm505_vm2, %v3478_v62, %v3477_v4  ;;  %v3480_v1 = vrot.slane %v2239_v38, 2 }
 0x142   :  { %3472 = vst [vmem:[#allocation33_spill] sm:$0xff] %v2644_v21  ;;  %3476 = vst [vmem:[#allocation34_spill] sm:$0xff] %v2655_v49  ;;  %v3481_v45 = vrot.slane %v2224_v27, 2  ;;  %740 = vrot.lane.b32.xlu0 %v3483_v34, %s2105_s19  ;;  %v3484_v16 = vrot.slane %v2622_v50, 1  ;;  %v2682_v4 = vsel %vm505_vm2, %v810_v7, %v3485_v5  ;;  %v3486_v62 = vrot.slane %v2622_v50, 3 }
 0x143   :  { %3479 = vst [vmem:[#allocation35_spill] sm:$0xff] %v2662_v20  ;;  %v3489_v34 = vrot.slane %v2379_v6, 4  ;;  %v3492_v5 = vrot.slane %v2461_v18, 4  ;;  %v3493_v7 = vrot.slane %v2431_v19, 4  ;;  %v518_v19 = vrot.slane %v2570_v29, 2 }
 0x144   :  { %v2669_v37 = vsel %vm505_vm2, %v3481_v45, %v3480_v1  ;;  %v2677_v36 = vsel %vm416_vm1, %v722_v44, %v3484_v16  ;;  %v2687_v20 = vsel %vm886_vm3, %v899_v28, %v3486_v62  ;;  %v3487_v1 = vrot.slane %v2502_v42, 2 }
 0x145   :  { %3482 = vst [vmem:[#allocation36_spill] sm:$0xff] %v2669_v37  ;;  %v3490_v44 = vrot.slane %v2351_v40, 4  ;;  %v2706_v37 = vsel %vm1555_vm4, %v3493_v7, %v3492_v5  ;;  %v3495_v28 = vrot.slane %v2471_v11, 4  ;;  %v3496_v62 = vrot.slane %v2440_v31, 4 }
 0x146   :  { %v2692_v45 = vsel %vm505_vm2, %v515_v47, %v3487_v1  ;;  %3494 = vst [vmem:[#allocation39_spill] sm:$0xff] %v2706_v37  ;;  %v429_v1 = vrot.slane %v2570_v29, 1  ;;  %1327 = vrot.lane.b32.xlu0 %v2308_v9, %s2105_s19  ;;  %v3501_v37 = vrot.slane %v2610_v17, 1 }
 0x147   :  { %3488 = vst [vmem:[#allocation37_spill] sm:$0xff] %v2692_v45  ;;  %v2699_v16 = vsel %vm1555_vm4, %v3490_v44, %v3489_v34  ;;  %v2713_v47 = vsel %vm1555_vm4, %v3496_v62, %v3495_v28  ;;  %v2717_v34 = vpop.f32.mrb[20].mxu0  ;;  %v3499_v44 = vrot.slane %v2287_v60, 2  ;;  %v3503_v45 = vrot.slane %v2287_v60, 3 }
 0x148   :  { %3491 = vst [vmem:[#allocation38_spill] sm:$0xff] %v2699_v16  ;;  %3497 = vst [vmem:[#allocation40_spill] sm:$0xff] %v2713_v47  ;;  %v2724_v7 = vpop.f32.mrb[21].mxu0  ;;  %v2741_v9 = vsel %vm416_vm1, %v429_v1, %v3501_v37  ;;  %v3504_v16 = vrot.slane %v2610_v17, 2 }
 0x149   :  { %3498 = vst [vmem:[#allocation41_spill] sm:$0xff] %v2717_v34  ;;  %1417 = vrot.lane.b32.xlu1 %v3499_v44, %s2099_s1  ;;  %v725_v31 = vrot.slane %v2724_v7, 1  ;;  %v902_v28 = vrot.slane %v2724_v7, 3  ;;  %v2730_v62 = vpop.f32.mrb[22].mxu0  ;;  %v813_v40 = vrot.slane %v2724_v7, 2  ;;  %3502 = vst [vmem:[#allocation43_spill] sm:$0xff] %v2741_v9 }
 0x14a   :  { %3500 = vst [vmem:[#allocation42_spill] sm:$0xff] %v2730_v62  ;;  %v2733_v47 = vpop.f32.mrb[23].mxu0  ;;  %v2749_v49 = vsel %vm505_vm2, %v518_v19, %v3504_v16  ;;  %1415 = vrot.lane.b32.xlu0 %v2313_v10, %s2099_s1  ;;  %v3508_v10 = vrot.slane %v2329_v23, 2  ;;  %v3510_v9 = vrot.slane %v2329_v23, 3  ;;  %v3511_v42 = vrot.slane %v2730_v62, 1 }
 0x14b   :  { %v3408_v44 = vrot.slane %v2733_v47, 1  ;;  %v3407_v5 = vrot.slane %v2733_v47, 2  ;;  %3505 = vst [vmem:[#allocation44_spill] sm:$0xff] %v2749_v49  ;;  %v2768_v16 = vpop.f32.mrb[24].mxu0 }
 0x14c   :  { %3507 = vst [vmem:[#allocation45_spill] sm:$0xff] %v2768_v16  ;;  %v2773_v19 = vpop.f32.mrb[25].mxu0 }
 0x14d   :  { %1505 = vrot.lane.b32.xlu1 %v3503_v45, %s2106_s3  ;;  %v2756_v29 = vsel %vm416_vm1, %v725_v31, %v3408_v44  ;;  %v2761_v37 = vsel %vm505_vm2, %v813_v40, %v3407_v5  ;;  %v3506_v45 = vrot.slane %v2733_v47, 3  ;;  %3509 = vst [vmem:[#allocation46_spill] sm:$0xff] %v2773_v19  ;;  %v728_v31 = vrot.slane %v2773_v19, 1  ;;  %v2779_v5 = vpop.f32.mrb[26].mxu0 }
 0x14e   :  { %1503 = vrot.lane.b32.xlu0 %v2324_v15, %s2106_s3  ;;  %v905_v40 = vrot.slane %v2773_v19, 3  ;;  %v2783_v44 = vpop.f32.mrb[27].mxu0  ;;  %v816_v49 = vrot.slane %v2773_v19, 2 }
 0x14f   :  { %v2766_v1 = vsel %vm886_vm3, %v902_v28, %v3506_v45  ;;  %v432_v28 = vrot.slane %v2717_v34, 1  ;;  %v521_v45 = vrot.slane %v2717_v34, 2  ;;  %v3415_v17 = vrot.slane %v2783_v44, 1 }
 0x150   :  { %v3417_v15 = vrot.slane %v2783_v44, 3 }
 0x151   :  { %828 = vrot.lane.b32.xlu1 %v3508_v10, %s2099_s1  ;;  %v2797_v34 = vsel %vm416_vm1, %v728_v31, %v3415_v17  ;;  %v3418_v10 = vrot.slane %v2783_v44, 2  ;;  %v2816_v31 = vsel %vm416_vm1, %v432_v28, %v3511_v42  ;;  %v3513_v17 = vrot.slane %v2730_v62, 2 }
 0x152   :  { %738 = vrot.lane.b32.xlu0 %v2363_v46, %s2105_s19  ;;  %v2804_v21 = vsel %vm886_vm3, %v905_v40, %v3417_v15  ;;  %v2811_v46 = vpop.f32.mrb[28].mxu0  ;;  %3512 = vst [vmem:[#allocation47_spill] sm:$0xff] %v2816_v31  ;;  %v3515_v40 = vrot.slane %v2291_v63, 1  ;;  %v3516_v42 = vrot.slane %v2291_v63, 2  ;;  %v524_v28 = vrot.slane %v2768_v16, 2 }
 0x153   :  { %v2821_v19 = vsel %vm505_vm2, %v521_v45, %v3513_v17  ;;  %v2826_v15 = vpop.f32.mrb[29].mxu0  ;;  %v435_v17 = vrot.slane %v2768_v16, 1  ;;  %v3423_v45 = vrot.slane %v2779_v5, 1 }
 0x154   :  { %3514 = vst [vmem:[#allocation48_spill] sm:$0xff] %v2821_v19  ;;  %v908_v19 = vrot.slane %v2826_v15, 3 }
 0x155   :  { %917 = vrot.lane.b32.xlu1 %v3510_v9, %s2106_s3  ;;  %v2809_v9 = vsel %vm505_vm2, %v816_v49, %v3418_v10  ;;  %v2830_v49 = vpop.f32.mrb[30].mxu0 }
 0x156   :  { %826 = vrot.lane.b32.xlu0 %v2368_v59, %s2099_s1  ;;  %v2832_v10 = vpop.f32.mrb[31].mxu0  ;;  %v3517_v59 = vrot.slane %v2291_v63, 3 }
 0x157   :  { %v3425_v62 = vrot.slane %v2832_v10, 3 }
 0x159   :  { %1325 = vrot.lane.b32.xlu1 %v3515_v40, %s2105_s19  ;;  %v2856_v40 = vsel %vm416_vm1, %v435_v17, %v3423_v45  ;;  %v819_v17 = vrot.slane %v2826_v15, 2  ;;  %v2877_v45 = vsel %vm886_vm3, %v908_v19, %v3425_v62  ;;  %v528_v19 = vrot.slane %v2830_v49, 2 }
 0x15a   :  { %915 = vrot.lane.b32.xlu0 %v2377_v56, %s2106_s3  ;;  %v3424_v56 = vrot.slane %v2832_v10, 1  ;;  %v3522_v62 = vrot.slane %v2415_v13, 1 }
 0x15d   :  { %1413 = vrot.lane.b32.xlu1 %v3516_v42, %s2099_s1  ;;  %v731_v42 = vrot.slane %v2826_v15, 1 }
 0x15e   :  { %1323 = vrot.lane.b32.xlu0 %v2334_v24, %s2105_s19  ;;  %v3519_v24 = vrot.slane %v2371_v2, 1 }
 0x15f   :  { %v2871_v16 = vsel %vm416_vm1, %v731_v42, %v3424_v56  ;;  %v438_v42 = vrot.slane %v2811_v46, 1  ;;  %v439_v56 = vrot.slane %v2830_v49, 1 }
 0x161   :  { %1501 = vrot.lane.b32.xlu1 %v3517_v59, %s2106_s3  ;;  %v3518_v59 = vrot.slane %v2779_v5, 2 }
 0x162   :  { %1411 = vrot.lane.b32.xlu0 %v2356_v52, %s2099_s1  ;;  %v3521_v52 = vrot.slane %v2371_v2, 2 }
 0x163   :  { %v2861_v31 = vsel %vm505_vm2, %v524_v28, %v3518_v59  ;;  %v3520_v28 = vrot.slane %v2832_v10, 2 }
 0x165   :  { %1337 = vrot.lane.b32.xlu1 %v3519_v24, %s2105_s19  ;;  %v2882_v59 = vsel %vm505_vm2, %v819_v17, %v3520_v28  ;;  %v527_v24 = vrot.slane %v2811_v46, 2  ;;  %v3523_v17 = vrot.slane %v2371_v2, 3 }
 0x166   :  { %1499 = vrot.lane.b32.xlu0 %v2345_v35, %s2106_s3  ;;  %v2902_v35 = vsel %vm416_vm1, %v438_v42, %v439_v56  ;;  %v3526_v42 = vrot.slane %v2379_v6, 1  ;;  %vm595_vm1 = vcmask 259072  }
 0x167   :  { %v2907_v28 = vsel %vm505_vm2, %v527_v24, %v528_v19  ;;  %v3527_v24 = vrot.slane %v2379_v6, 2 }
 0x169   :  { %1425 = vrot.lane.b32.xlu1 %v3521_v52, %s2099_s1  ;;  %v3524_v52 = vrot.slane %v2415_v13, 2 }
 0x16a   :  { %1513 = vrot.lane.b32.xlu0 %v3523_v17, %s2106_s3 }
 0x16d   :  { %744 = vrot.lane.b32.xlu1 %v3522_v62, %s2105_s19  ;;  %v3525_v62 = vrot.slane %v2415_v13, 3 }
 0x16e   :  { %1335 = vrot.lane.b32.xlu0 %v2399_v61, %s2105_s19  ;;  %v3528_v61 = vrot.slane %v2379_v6, 3 }
 0x171   :  { %832 = vrot.lane.b32.xlu1 %v3524_v52, %s2099_s1 }
 0x172   :  { %1423 = vrot.lane.b32.xlu0 %v2411_v22, %s2099_s1  ;;  %v3529_v22 = vrot.slane %v2461_v18, 1 }
 0x175   :  { %921 = vrot.lane.b32.xlu1 %v3525_v62, %s2106_s3 }
 0x176   :  { %830 = vrot.lane.b32.xlu0 %v2453_v48, %s2099_s1 }
 0x179   :  { %1333 = vrot.lane.b32.xlu1 %v3526_v42, %s2105_s19 }
 0x17a   :  { %919 = vrot.lane.b32.xlu0 %v2458_v25, %s2106_s3  ;;  %v3530_v25 = vrot.slane %v2461_v18, 2 }
 0x17d   :  { %1421 = vrot.lane.b32.xlu1 %v3527_v24, %s2099_s1  ;;  %v3534_v24 = vrot.slane %v2511_v26, 3 }
 0x17e   :  { %1331 = vrot.lane.b32.xlu0 %v2421_v57, %s2105_s19  ;;  %v2948_v57 = vpop.permute.xlu0 %1055 }
 0x181   :  { %1509 = vrot.lane.b32.xlu1 %v3528_v61, %s2106_s3 }
 0x182   :  { %1419 = vrot.lane.b32.xlu0 %v2469_v51, %s2099_s1  ;;  %v3533_v51 = vrot.slane %v2471_v11, 3 }
 0x185   :  { %1511 = vrot.lane.b32.xlu1 %v2426_v0, %s2106_s3  ;;  %v3531_v0 = vrot.slane %v2511_v26, 1 }
 0x186   :  { %1507 = vrot.lane.b32.xlu0 %v2445_v30, %s2106_s3  ;;  %v3532_v30 = vrot.slane %v2511_v26, 2 }
 0x189   :  { %742 = vrot.lane.b32.xlu1 %v2480_v32, %s2105_s19 }
 0x18a   :  { %1433 = vrot.lane.b32.xlu0 %v3530_v25, %s2099_s1 }
 0x18b   :  { %v1322_v48 = vpop.permute.xlu1 %1321 }
 0x18c   :  { %v1320_v32 = vpop.permute.xlu0 %1319  ;;  %v1366_v52 = vadd.f32 %v1322_v48, %v2329_v23  ;;  %v3535_v23 = vrot.slane %v2471_v11, 1  ;;  %v3536_v48 = vld [vmem:[#allocation12_spill] sm:$0xff] }
 0x18d   :  { %1345 = vrot.lane.b32.xlu1 %v3529_v22, %s2105_s19  ;;  %v1365_v42 = vadd.f32 %v1320_v32, %v2303_v8  ;;  %v3537_v8 = vrot.slane %v3536_v48, 4 }
 0x18e   :  { %1343 = vrot.lane.b32.xlu0 %v2507_v41, %s2105_s19 }
 0x18f   :  { %v1410_v17 = vpop.permute.xlu1 %1409 }
 0x190   :  { %v1408_v62 = vpop.permute.xlu0 %1407  ;;  %v1454_v41 = vadd.f32 %v1410_v17, %v1366_v52 }
 0x191   :  { %748 = vrot.lane.b32.xlu1 %v3531_v0, %s2105_s19  ;;  %v1453_v61 = vadd.f32 %v1408_v62, %v1365_v42 }
 0x192   :  { %1517 = vrot.lane.b32.xlu0 %v3533_v51, %s2106_s3  ;;  %v3538_v51 = vld [vmem:[#allocation20_spill] sm:$0xff] }
 0x193   :  { %v1498_v22 = vpop.permute.xlu1 %1497 }
 0x194   :  { %v1542_v25 = vadd.f32 %v1498_v22, %v1454_v41  ;;  %v1496_v0 = vpop.permute.xlu0 %1495 }
 0x195   :  { %836 = vrot.lane.b32.xlu1 %v3532_v30, %s2099_s1  ;;  %v1541_v30 = vadd.f32 %v1496_v0, %v1453_v61 }
 0x196   :  { %746 = vrot.lane.b32.xlu0 %v2540_v12, %s2105_s19  ;;  %v1599_v32 = vadd.f32 %v3537_v8, %v1542_v25 }
 0x197   :  { %v1598_v17 = vadd.f32 %v3538_v51, %v1541_v30  ;;  %v737_v12 = vpop.permute.xlu1 %736  ;;  %v3540_v30 = vld [vmem:[#allocation22_spill] sm:$0xff] }
 0x198   :  { %v1623_v52 = vsel %vm1613_vm5, %v1599_v32, -inf  ;;  %v735_v62 = vpop.permute.xlu0 %734 }
 0x199   :  { %925 = vrot.lane.b32.xlu1 %v3534_v24, %s2106_s3  ;;  %v1622_v42 = vsel %vm975_vm6, %v1598_v17, -inf  ;;  %v3539_v24 = vrot.slane %v2471_v11, 2  ;;  %v782_v25 = vadd.f32 %v735_v62, %v2224_v27 }
 0x19a   :  { %834 = vrot.lane.b32.xlu0 %v2545_v55, %s2099_s1  ;;  %v2981_v41 = vmax.f32 %v1622_v42, %v1623_v52  ;;  %v783_v55 = vadd.f32 %v737_v12, %v2239_v38  ;;  %v3542_v42 = vld [vmem:[#allocation24_spill] sm:$0xff] }
 0x19b   :  { %v825_v61 = vpop.permute.xlu1 %824 }
 0x19c   :  { %v823_v22 = vpop.permute.xlu0 %822  ;;  %v871_v0 = vadd.f32 %v825_v61, %v783_v55  ;;  %v3543_v61 = vld [vmem:[#allocation15_spill] sm:$0xff] }
 0x19d   :  { %1341 = vrot.lane.b32.xlu1 %v3535_v23, %s2105_s19  ;;  %v870_v23 = vadd.f32 %v823_v22, %v782_v25  ;;  %v3544_v25 = vld [vmem:[#allocation14_spill] sm:$0xff] }
 0x19e   :  { %923 = vrot.lane.b32.xlu0 %v2550_v33, %s2106_s3  ;;  %v3541_v33 = vld [vmem:[#allocation23_spill] sm:$0xff] }
 0x19f   :  { %v914_v48 = vpop.permute.xlu1 %913 }
 0x1a0   :  { %v960_v8 = vadd.f32 %v914_v48, %v871_v0  ;;  %v912_v32 = vpop.permute.xlu0 %911 }
 0x1a1   :  { %1429 = vrot.lane.b32.xlu1 %v3539_v24, %s2099_s1  ;;  %v959_v51 = vadd.f32 %v912_v32, %v870_v23 }
 0x1a2   :  { %1339 = vrot.lane.b32.xlu0 %v3540_v30, %s2105_s19  ;;  %v978_v17 = vsel %vm977_vm7, %v960_v8, -inf }
 0x1a3   :  { %v1318_v12 = vpop.permute.xlu1 %1317 }
 0x1a4   :  { %v1316_v62 = vpop.permute.xlu0 %1315  ;;  %v1364_v55 = vadd.f32 %v1318_v12, %v3543_v61  ;;  %v3549_v12 = vld [vmem:[#allocation29_spill] sm:$0xff] }
 0x1a5   :  { %1431 = vrot.lane.b32.xlu1 %v2555_v43, %s2099_s1  ;;  %v976_v43 = vsel %vm975_vm6, %v959_v51, -inf  ;;  %v1363_v0 = vadd.f32 %v1316_v62, %v3544_v25 }
 0x1a6   :  { %1427 = vrot.lane.b32.xlu0 %v2560_v39, %s2099_s1  ;;  %v979_v52 = vmax.f32 %v976_v43, %v978_v17  ;;  %v3545_v39 = vrot.slane %v2622_v50, 1 }
 0x1a7   :  { %v1406_v24 = vpop.permute.xlu1 %1405 }
 0x1a8   :  { %v1404_v22 = vpop.permute.xlu0 %1403  ;;  %v1452_v30 = vadd.f32 %v1406_v24, %v1364_v55  ;;  %v3550_v55 = vrot.slane %v2622_v50, 3 }
 0x1a9   :  { %1519 = vrot.lane.b32.xlu1 %v3541_v33, %s2106_s3  ;;  %v1451_v23 = vadd.f32 %v1404_v22, %v1363_v0  ;;  %v3547_v33 = vld [vmem:[#allocation13_spill] sm:$0xff] }
 0x1aa   :  { %750 = vrot.lane.b32.xlu0 %v2677_v36, %s2105_s19  ;;  %v3546_v36 = vrot.slane %v2622_v50, 2  ;;  %v3548_v17 = vrot.slane %v3547_v33, 4 }
 0x1ab   :  { %v1494_v48 = vpop.permute.xlu1 %1493 }
 0x1ac   :  { %v1540_v8 = vadd.f32 %v1494_v48, %v1452_v30  ;;  %v1492_v32 = vpop.permute.xlu0 %1491 }
 0x1ad   :  { %1515 = vrot.lane.b32.xlu1 %v3542_v42, %s2106_s3  ;;  %v1539_v51 = vadd.f32 %v1492_v32, %v1451_v23  ;;  %v3552_v32 = vld [vmem:[#allocation19_spill] sm:$0xff] }
 0x1ae   :  { %838 = vrot.lane.b32.xlu0 %v2682_v4, %s2099_s1  ;;  %v1597_v43 = vadd.f32 %v3548_v17, %v1540_v8 }
 0x1af   :  { %v1596_v62 = vadd.f32 %v3549_v12, %v1539_v51 }
 0x1b0   :  { %v1614_v4 = vsel %vm1613_vm5, %v1597_v43, -inf }
 0x1b1   :  { %752 = vrot.lane.b32.xlu1 %v3545_v39, %s2105_s19  ;;  %v1612_v61 = vsel %vm975_vm6, %v1596_v62, -inf  ;;  %v3551_v39 = vrot.slane %v2733_v47, 1  ;;  %v3556_v62 = vld [vmem:[#allocation30_spill] sm:$0xff] }
 0x1b2   :  { %927 = vrot.lane.b32.xlu0 %v2687_v20, %s2106_s3  ;;  %v3021_v22 = vmax.f32 %v1612_v61, %v1614_v4 }
 0x1b3   :  { %v1330_v42 = vpop.permute.xlu1 %1329 }
 0x1b4   :  { %v741_v24 = vpop.permute.xlu0 %740  ;;  %v1370_v20 = vadd.f32 %v1330_v42, %v2511_v26  ;;  %v3554_v26 = vrot.slane %v2287_v60, 4 }
 0x1b5   :  { %840 = vrot.lane.b32.xlu1 %v3546_v36, %s2099_s1 }
 0x1b6   :  { %754 = vrot.lane.b32.xlu0 %v2756_v29, %s2105_s19  ;;  %v3553_v29 = vrot.slane %v2733_v47, 2 }
 0x1b8   :  { %v1328_v0 = vpop.permute.xlu0 %1327 }
 0x1b9   :  { %929 = vrot.lane.b32.xlu1 %v3550_v55, %s2106_s3  ;;  %v1369_v51 = vadd.f32 %v1328_v0, %v3552_v32 }
 0x1ba   :  { %842 = vrot.lane.b32.xlu0 %v2761_v37, %s2099_s1  ;;  %v3555_v37 = vrot.slane %v2733_v47, 3 }
 0x1bb   :  { %v1418_v25 = vpop.permute.xlu1 %1417 }
 0x1bc   :  { %v1458_v30 = vadd.f32 %v1418_v25, %v1370_v20  ;;  %v1416_v8 = vpop.permute.xlu0 %1415  ;;  %v980_v25 = vrot.slane %v979_v52, 4 }
 0x1bd   :  { %756 = vrot.lane.b32.xlu1 %v3551_v39, %s2105_s19  ;;  %v1457_v33 = vadd.f32 %v1416_v8, %v1369_v51 }
 0x1be   :  { %931 = vrot.lane.b32.xlu0 %v2766_v1, %s2106_s3  ;;  %v3557_v1 = vrot.slane %v2783_v44, 1  ;;  %v981_v8 = vmax.f32 %v979_v52, %v980_v25 }
 0x1bf   :  { %v1506_v23 = vpop.permute.xlu1 %1505 }
 0x1c0   :  { %v1546_v48 = vadd.f32 %v1506_v23, %v1458_v30  ;;  %v1504_v43 = vpop.permute.xlu0 %1503 }
 0x1c1   :  { %844 = vrot.lane.b32.xlu1 %v3553_v29, %s2099_s1  ;;  %v1545_v12 = vadd.f32 %v1504_v43, %v1457_v33  ;;  %v982_v33 = vrot.slane %v981_v8, 2 }
 0x1c2   :  { %v1603_v36 = vadd.f32 %v3554_v26, %v1546_v48  ;;  %758 = vrot.lane.b32.xlu0 %v2797_v34, %s2105_s19  ;;  %v785_v34 = vadd.f32 %v741_v24, %v2319_v14  ;;  %v3558_v48 = vrot.slane %v2783_v44, 2 }
 0x1c3   :  { %v829_v17 = vpop.permute.xlu1 %828  ;;  %v1602_v42 = vadd.f32 %v3556_v62, %v1545_v12 }
 0x1c4   :  { %v739_v61 = vpop.permute.xlu0 %738  ;;  %v1641_v60 = vsel %vm1613_vm5, %v1603_v36, -inf  ;;  %v873_v30 = vadd.f32 %v829_v17, %v785_v34  ;;  %v3559_v36 = vrot.slane %v2783_v44, 3 }
 0x1c5   :  { %933 = vrot.lane.b32.xlu1 %v3555_v37, %s2106_s3  ;;  %v1640_v55 = vsel %vm975_vm6, %v1602_v42, -inf  ;;  %v784_v23 = vadd.f32 %v739_v61, %v2296_v3  ;;  %v983_v61 = vmax.f32 %v981_v8, %v982_v33 }
 0x1c6   :  { %v3050_v20 = vmax.f32 %v1640_v55, %v1641_v60  ;;  %846 = vrot.lane.b32.xlu0 %v2809_v9, %s2099_s1  ;;  %v3562_v55 = vrot.slane %v2291_v63, 4 }
 0x1c7   :  { %v918_v4 = vpop.permute.xlu1 %917 }
 0x1c8   :  { %v827_v39 = vpop.permute.xlu0 %826  ;;  %v962_v32 = vadd.f32 %v918_v4, %v873_v30  ;;  %v3561_v4 = vrot.slane %v2832_v10, 1  ;;  %v3563_v30 = vrot.slane %v2832_v10, 2 }
 0x1c9   :  { %760 = vrot.lane.b32.xlu1 %v3557_v1, %s2105_s19  ;;  %v872_v51 = vadd.f32 %v827_v39, %v784_v23  ;;  %v984_v23 = vrot.slane %v983_v61, 1 }
 0x1ca   :  { %935 = vrot.lane.b32.xlu0 %v2804_v21, %s2106_s3  ;;  %v987_v52 = vsel %vm977_vm7, %v962_v32, -inf }
 0x1cb   :  { %v1326_v0 = vpop.permute.xlu1 %1325 }
 0x1cc   :  { %v1368_v9 = vadd.f32 %v1326_v0, %v2415_v13  ;;  %v916_v26 = vpop.permute.xlu0 %915  ;;  %v3560_v13 = vld [vmem:[#allocation17_spill] sm:$0xff] }
 0x1cd   :  { %848 = vrot.lane.b32.xlu1 %v3558_v48, %s2099_s1  ;;  %v961_v24 = vadd.f32 %v916_v26, %v872_v51  ;;  %v3565_v26 = vrot.slane %v2461_v18, 3 }
 0x1ce   :  { %762 = vrot.lane.b32.xlu0 %v2871_v16, %s2105_s19 }
 0x1cf   :  { %v1414_v29 = vpop.permute.xlu1 %1413  ;;  %v986_v21 = vsel %vm975_vm6, %v961_v24, -inf  ;;  %v1870_v24 = vld [vmem:[%s3368_s4] ss:$0 sm:$0xff] }
 0x1d0   :  { %v1456_v17 = vadd.f32 %v1414_v29, %v1368_v9  ;;  %v988_v12 = vmax.f32 %v986_v21, %v987_v52  ;;  %v1324_v62 = vpop.permute.xlu0 %1323  ;;  %v3564_v29 = vrot.slane %v2832_v10, 3 }
 0x1d1   :  { %937 = vrot.lane.b32.xlu1 %v3559_v36, %s2106_s3  ;;  %v1367_v42 = vadd.f32 %v1324_v62, %v3560_v13 }
 0x1d2   :  { %v989_v60 = vrot.slane %v988_v12, 4  ;;  %850 = vrot.lane.b32.xlu0 %v2882_v59, %s2099_s1 }
 0x1d3   :  { %v1502_v43 = vpop.permute.xlu1 %1501 }
 0x1d4   :  { %v1544_v37 = vadd.f32 %v1502_v43, %v1456_v17  ;;  %v990_v25 = vmax.f32 %v988_v12, %v989_v60  ;;  %v1412_v0 = vpop.permute.xlu0 %1411 }
 0x1d5   :  { %764 = vrot.lane.b32.xlu1 %v3561_v4, %s2105_s19  ;;  %v1455_v39 = vadd.f32 %v1412_v0, %v1367_v42  ;;  %v3567_v4 = vld [vmem:[#allocation26_spill] sm:$0xff]  ;;  %v3569_v0 = vrot.slane %v2319_v14, 1 }
 0x1d6   :  { %v1601_v1 = vadd.f32 %v3562_v55, %v1544_v37  ;;  %v991_v48 = vrot.slane %v990_v25, 2  ;;  %939 = vrot.lane.b32.xlu0 %v2877_v45, %s2106_s3  ;;  %v3566_v45 = vld [vmem:[#allocation32_spill] sm:$0xff] }
 0x1d7   :  { %v1338_v16 = vpop.permute.xlu1 %1337 }
 0x1d8   :  { %v1374_v34 = vadd.f32 %v1338_v16, %v2733_v47  ;;  %v992_v8 = vmax.f32 %v990_v25, %v991_v48  ;;  %v1500_v51 = vpop.permute.xlu0 %1499  ;;  %v985_v47 = vmax.f32 %v983_v61, %v984_v23  ;;  %v1632_v43 = vsel %vm1613_vm5, %v1601_v1, -inf  ;;  %v3570_v23 = vld [vmem:[#allocation27_spill] sm:$0xff] }
 0x1d9   :  { %852 = vrot.lane.b32.xlu1 %v3563_v30, %s2099_s1  ;;  %v1543_v59 = vadd.f32 %v1500_v51, %v1455_v39  ;;  %v3568_v61 = vrot.slane %v2371_v2, 4 }
 0x1da   :  { %v993_v9 = vrot.slane %v992_v8, 1  ;;  %1521 = vrot.lane.b32.xlu0 %v3565_v26, %s2106_s3  ;;  %v1058_v62 = vadd.f32 %v2948_v57, %v985_v47  ;;  %v3572_v47 = vrot.slane %v2239_v38, 1 }
 0x1db   :  { %v1426_v63 = vpop.permute.xlu1 %1425  ;;  %v1600_v36 = vadd.f32 %v3566_v45, %v1543_v59  ;;  %v3573_v45 = vld [vmem:[#allocation21_spill] sm:$0xff] }
 0x1dc   :  { %v1462_v32 = vadd.f32 %v1426_v63, %v1374_v34  ;;  %v994_v17 = vmax.f32 %v992_v8, %v993_v9  ;;  %v1514_v21 = vpop.permute.xlu0 %1513  ;;  %v1066_v39 = vmax.f32 %v1058_v62, 0.0 }
 0x1dd   :  { %941 = vrot.lane.b32.xlu1 %v3564_v29, %s2106_s3  ;;  %v1631_v12 = vsel %vm975_vm6, %v1600_v36, -inf  ;;  %v3574_v36 = vrot.slane %v3573_v45, 1 }
 0x1de   :  { %v1550_v37 = vadd.f32 %v1514_v21, %v1462_v32  ;;  %v1059_v13 = vadd.f32 %v2948_v57, %v994_v17  ;;  %v3099_v42 = vmax.f32 %v1631_v12, %v1632_v43  ;;  %445 = vrot.lane.b32.xlu0 %v3567_v4, %s2105_s19  ;;  %v3577_v43 = vrot.slane %v2319_v14, 2 }
 0x1df   :  { %v745_v33 = vpop.permute.xlu1 %744 }
 0x1e0   :  { %v787_v52 = vadd.f32 %v745_v33, %v2406_v54  ;;  %v1607_v60 = vadd.f32 %v3568_v61, %v1550_v37  ;;  %v1067_v16 = vmax.f32 %v1059_v13, 0.0  ;;  %v1336_v25 = vpop.permute.xlu0 %1335  ;;  %v3579_v37 = vld [vmem:[#allocation43_spill] sm:$0xff] }
 0x1e1   :  { %1691 = vrot.lane.b32.xlu1 %v1870_v24, %s2105_s19  ;;  %v1373_v34 = vadd.f32 %v1336_v25, %v2724_v7  ;;  %v3571_v7 = vrot.slane %v2406_v54, 1 }
 0x1e2   :  { %v1086_v30 = vrot.slane %v1067_v16, 7  ;;  %449 = vrot.lane.b32.xlu0 %v3570_v23, %s2105_s19 }
 0x1e3   :  { %v833_v55 = vpop.permute.xlu1 %832 }
 0x1e4   :  { %v875_v1 = vadd.f32 %v833_v55, %v787_v52  ;;  %v1424_v2 = vpop.permute.xlu0 %1423  ;;  %v3112_v8 = vsel %vm1087_vm8, %v1086_v30, %v1066_v39  ;;  %v3576_v52 = vld [vmem:[#allocation28_spill] sm:$0xff]  ;;  %v3580_v55 = vld [vmem:[#allocation31_spill] sm:$0xff] }
 0x1e5   :  { %447 = vrot.lane.b32.xlu1 %v3569_v0, %s2105_s19  ;;  %v1461_v32 = vadd.f32 %v1424_v2, %v1373_v34  ;;  %v3581_v16 = vrot.slane %v3580_v55, 1  ;;  %v3583_v34 = vld [vmem:[#allocation35_spill] sm:$0xff]  ;;  %v3584_v30 = vld [vmem:[#allocation16_spill] sm:$0xff] }
 0x1e6   :  { %441 = vrot.lane.b32.xlu0 %v2629_v58, %s2105_s19  ;;  %v3575_v58 = vld [vmem:[#allocation33_spill] sm:$0xff] }
 0x1e7   :  { %v922_v48 = vpop.permute.xlu1 %921 }
 0x1e8   :  { %v964_v63 = vadd.f32 %v922_v48, %v875_v1  ;;  %v831_v29 = vpop.permute.xlu0 %830  ;;  %v3582_v1 = vld [vmem:[#allocation34_spill] sm:$0xff] }
 0x1e9   :  { %451 = vrot.lane.b32.xlu1 %v3571_v7, %s2105_s19  ;;  %v3585_v7 = vrot.slane %v2406_v54, 2 }
 0x1ea   :  { %453 = vrot.lane.b32.xlu0 %v2634_v53, %s2105_s19  ;;  %v3578_v53 = vrot.slane %v2379_v6, 4  ;;  %v1659_v6 = vsel %vm1613_vm5, %v1607_v60, -inf }
 0x1eb   :  { %v1334_v51 = vpop.permute.xlu1 %1333 }
 0x1ec   :  { %v1372_v59 = vadd.f32 %v1334_v51, %v2622_v50  ;;  %v920_v24 = vpop.permute.xlu0 %919 }
 0x1ed   :  { %443 = vrot.lane.b32.xlu1 %v3572_v47, %s2105_s19  ;;  %v3587_v47 = vld [vmem:[#allocation38_spill] sm:$0xff] }
 0x1ee   :  { %534 = vrot.lane.b32.xlu0 %v3575_v58, %s2099_s1 }
 0x1ef   :  { %v1422_v9 = vpop.permute.xlu1 %1421 }
 0x1f0   :  { %v1460_v26 = vadd.f32 %v1422_v9, %v1372_v59  ;;  %v1332_v17 = vpop.permute.xlu0 %1331  ;;  %v3586_v59 = vld [vmem:[#allocation47_spill] sm:$0xff] }
 0x1f1   :  { %455 = vrot.lane.b32.xlu1 %v3574_v36, %s2105_s19  ;;  %v1371_v21 = vadd.f32 %v1332_v17, %v3576_v52  ;;  %v3588_v17 = vld [vmem:[#allocation42_spill] sm:$0xff] }
 0x1f2   :  { %457 = vrot.lane.b32.xlu0 %v3579_v37, %s2105_s19  ;;  %v3589_v52 = vrot.slane %v3588_v17, 1 }
 0x1f3   :  { %v1510_v33 = vpop.permute.xlu1 %1509 }
 0x1f4   :  { %v1548_v50 = vadd.f32 %v1510_v33, %v1460_v26  ;;  %v1420_v4 = vpop.permute.xlu0 %1419 }
 0x1f5   :  { %536 = vrot.lane.b32.xlu1 %v3577_v43, %s2099_s1  ;;  %v1459_v61 = vadd.f32 %v1420_v4, %v1371_v21 }
 0x1f6   :  { %v1605_v12 = vadd.f32 %v3578_v53, %v1548_v50  ;;  %538 = vrot.lane.b32.xlu0 %v3583_v34, %s2099_s1 }
 0x1f7   :  { %v1512_v62 = vpop.permute.xlu1 %1511 }
 0x1f8   :  { %v1549_v13 = vadd.f32 %v1512_v62, %v1461_v32  ;;  %v1508_v48 = vpop.permute.xlu0 %1507  ;;  %v1650_v33 = vsel %vm1613_vm5, %v1605_v12, -inf }
 0x1f9   :  { %459 = vrot.lane.b32.xlu1 %v3581_v16, %s2105_s19  ;;  %v1547_v32 = vadd.f32 %v1508_v48, %v1459_v61  ;;  %v3592_v61 = vld [vmem:[#allocation37_spill] sm:$0xff] }
 0x1fa   :  { %v1606_v25 = vadd.f32 %v3582_v1, %v1549_v13  ;;  %461 = vrot.lane.b32.xlu0 %v3586_v59, %s2105_s19 }
 0x1fb   :  { %v743_v0 = vpop.permute.xlu1 %742  ;;  %v1604_v9 = vadd.f32 %v3587_v47, %v1547_v32 }
 0x1fc   :  { %v1658_v39 = vsel %vm975_vm6, %v1606_v25, -inf  ;;  %v786_v23 = vadd.f32 %v743_v0, %v3584_v30  ;;  %v1434_v58 = vpop.permute.xlu0 %1433 }
 0x1fd   :  { %v3147_v2 = vmax.f32 %v1658_v39, %v1659_v6  ;;  %540 = vrot.lane.b32.xlu1 %v3585_v7, %s2099_s1  ;;  %v1649_v50 = vsel %vm975_vm6, %v1604_v9, -inf  ;;  %v3593_v6 = vrot.slane %v3573_v45, 2  ;;  %v3594_v7 = vrot.slane %v2779_v5, 1 }
 0x1fe   :  { %v874_v51 = vadd.f32 %v831_v29, %v786_v23  ;;  %v996_v29 = vsel %vm977_vm7, %v964_v63, -inf  ;;  %v3163_v43 = vmax.f32 %v1649_v50, %v1650_v33  ;;  %v3591_v63 = vrot.slane %v2239_v38, 2 }
 0x1ff   :  { %v1346_v26 = vpop.permute.xlu1 %1345 }
 0x200   :  { %v963_v60 = vadd.f32 %v920_v24, %v874_v51  ;;  %v1378_v36 = vadd.f32 %v1346_v26, %v2832_v10  ;;  %v3590_v24 = vld [vmem:[#allocation36_spill] sm:$0xff]  ;;  %v1344_v62 = vpop.permute.xlu0 %1343 }
 0x201   :  { %463 = vrot.lane.b32.xlu1 %v3589_v52, %s2105_s19  ;;  %530 = vrot.lane.b32.xlu0 %v3590_v24, %s2099_s1  ;;  %v1377_v4 = vadd.f32 %v1344_v62, %v2826_v15  ;;  %v3595_v51 = vld [vmem:[#allocation44_spill] sm:$0xff] }
 0x202   :  { %v995_v21 = vsel %vm975_vm6, %v963_v60, -inf  ;;  %v3165_v53 = vadd.f32 %v1434_v58, %v1378_v36  ;;  %v3596_v60 = vld [vmem:[#allocation18_spill] sm:$0xff] }
 0x203   :  { %v997_v10 = vmax.f32 %v995_v21, %v996_v29  ;;  %v749_v37 = vpop.permute.xlu1 %748 }
 0x204   :  { %v789_v12 = vadd.f32 %v749_v37, %v3573_v45  ;;  %v1518_v34 = vpop.permute.xlu0 %1517 }
 0x205   :  { %v998_v13 = vrot.slane %v997_v10, 4  ;;  %532 = vrot.lane.b32.xlu1 %v3591_v63, %s2099_s1  ;;  %542 = vrot.lane.b32.xlu0 %v3592_v61, %s2099_s1  ;;  %v3599_v63 = vrot.slane %v2471_v11, 4  ;;  %v3602_v11 = vrot.slane %v2779_v5, 2 }
 0x207   :  { %v999_v16 = vmax.f32 %v997_v10, %v998_v13  ;;  %v837_v1 = vpop.permute.xlu1 %836 }
 0x208   :  { %v877_v25 = vadd.f32 %v837_v1, %v789_v12  ;;  %v747_v48 = vpop.permute.xlu0 %746  ;;  %v3598_v12 = vld [vmem:[#allocation48_spill] sm:$0xff] }
 0x209   :  { %v1000_v0 = vrot.slane %v999_v16, 2  ;;  %544 = vrot.lane.b32.xlu1 %v3593_v6, %s2099_s1  ;;  %465 = vrot.lane.b32.xlu0 %v2856_v40, %s2105_s19  ;;  %v788_v36 = vadd.f32 %v747_v48, %v3596_v60  ;;  %v3597_v40 = vrot.slane %v3580_v55, 2 }
 0x20b   :  { %v1001_v15 = vmax.f32 %v999_v16, %v1000_v0  ;;  %v926_v39 = vpop.permute.xlu1 %925  ;;  %v3601_v0 = vld [vmem:[#allocation46_spill] sm:$0xff] }
 0x20c   :  { %v966_v23 = vadd.f32 %v926_v39, %v877_v25  ;;  %v835_v9 = vpop.permute.xlu0 %834 }
 0x20d   :  { %v1002_v32 = vrot.slane %v1001_v15, 1  ;;  %467 = vrot.lane.b32.xlu1 %v3594_v7, %s2105_s19  ;;  %546 = vrot.lane.b32.xlu0 %v3595_v51, %s2099_s1  ;;  %v876_v50 = vadd.f32 %v835_v9, %v788_v36  ;;  %v3603_v7 = vld [vmem:[#allocation39_spill] sm:$0xff] }
 0x20f   :  { %v1003_v59 = vmax.f32 %v1001_v15, %v1002_v32  ;;  %v1342_v47 = vpop.permute.xlu1 %1341 }
 0x210   :  { %v1376_v58 = vadd.f32 %v1342_v47, %v2783_v44  ;;  %v924_v21 = vpop.permute.xlu0 %923  ;;  %v1005_v44 = vsel %vm977_vm7, %v966_v23, -inf }
 0x211   :  { %v1060_v26 = vadd.f32 %v2948_v57, %v1003_v59  ;;  %548 = vrot.lane.b32.xlu1 %v3597_v40, %s2099_s1  ;;  %469 = vrot.lane.b32.xlu0 %v2902_v35, %s2105_s19  ;;  %v965_v10 = vadd.f32 %v924_v21, %v876_v50  ;;  %v1076_v50 = vld [vmem:[#allocation7 + $0x30] sm:$0xff] }
 0x213   :  { %v1068_v33 = vmax.f32 %v1060_v26, 0.0  ;;  %v1430_v52 = vpop.permute.xlu1 %1429  ;;  %v1004_v35 = vsel %vm975_vm6, %v965_v10, -inf  ;;  %v3604_v26 = vld [vmem:[#allocation40_spill] sm:$0xff] }
 0x214   :  { %v1464_v29 = vadd.f32 %v1430_v52, %v1376_v58  ;;  %v1006_v16 = vmax.f32 %v1004_v35, %v1005_v44  ;;  %v1340_v1 = vpop.permute.xlu0 %1339  ;;  %v1074_v58 = vld [vmem:[#allocation7 + $0x20] sm:$0xff]  ;;  %v3605_v35 = vld [vmem:[#allocation25_spill] sm:$0xff] }
 0x215   :  { %v1089_v24 = vrot.slane %v1068_v33, 6  ;;  %471 = vrot.lane.b32.xlu1 %v439_v56, %s2105_s19  ;;  %550 = vrot.lane.b32.xlu0 %v3598_v12, %s2099_s1  ;;  %v3600_v56 = vrot.slane %v3588_v17, 2  ;;  %v1375_v6 = vadd.f32 %v1340_v1, %v3601_v0  ;;  %v1075_v33 = vld [vmem:[#allocation7 + $0x28] sm:$0xff] }
 0x216   :  { %v1552_v37 = vadd.f32 %v1518_v34, %v1464_v29  ;;  %v1007_v25 = vrot.slane %v1006_v16, 4  ;;  %v1952_v10 = vpack.c.bf16 %v1075_v33, %v1074_v58 }
 0x217   :  { %v1432_v62 = vpop.permute.xlu1 %1431  ;;  %v1091_v13 = vsel %vm1090_vm9, %v1089_v24, %v3112_v8  ;;  %v2107_v24 = vmov 0.0|0.0  }
 0x218   :  { %v1609_v61 = vadd.f32 %v3599_v63, %v1552_v37  ;;  %v1465_v34 = vadd.f32 %v1432_v62, %v1377_v4  ;;  %v1008_v39 = vmax.f32 %v1006_v16, %v1007_v25  ;;  %v1428_v8 = vpop.permute.xlu0 %1427  ;;  %1951 = vmatprep.subr.bf16.mxu1 %v2107_v24  ;;  %v1077_v37 = vld [vmem:[#allocation7 + $0x38] sm:$0xff] }
 0x219   :  { %552 = vrot.lane.b32.xlu1 %v3600_v56, %s2099_s1  ;;  %554 = vrot.lane.b32.xlu0 %v2861_v31, %s2099_s1  ;;  %v1463_v48 = vadd.f32 %v1428_v8, %v1375_v6  ;;  %v1955_v63 = vpack.c.bf16 %v1077_v37, %v1076_v50 }
 0x21a   :  { %v1009_v32 = vrot.slane %v1008_v39, 2  ;;  %1953 = vmatpush3.bf16.msra.mxu1 %v1952_v10 }
 0x21b   :  { %v1520_v15 = vpop.permute.xlu1 %1519  ;;  %1954 = vmatprep.subr.bf16.mxu1 %v2107_v24 }
 0x21c   :  { %v1553_v23 = vadd.f32 %v1520_v15, %v1465_v34  ;;  %v1010_v31 = vmax.f32 %v1008_v39, %v1009_v32  ;;  %v751_v47 = vpop.permute.xlu0 %750 }
 0x21d   :  { %556 = vrot.lane.b32.xlu1 %v3602_v11, %s2099_s1  ;;  %558 = vrot.lane.b32.xlu0 %v2907_v28, %s2099_s1  ;;  %v1668_v28 = vsel %vm1613_vm5, %v1609_v61, -inf  ;;  %v790_v62 = vadd.f32 %v751_v47, %v3605_v35 }
 0x21e   :  { %v3215_v51 = vadd.f32 %v3603_v7, %v1553_v23  ;;  %v1011_v9 = vrot.slane %v1010_v31, 1  ;;  %1956 = vmatpush3.bf16.msra.mxu1 %v1955_v63  ;;  %v1616_v63 = vrot.slane %v3021_v22, 4 }
 0x21f   :  { %v1516_v4 = vpop.permute.xlu1 %1515  ;;  %1957 = vmatprep.subr.bf16.mxu1 %v2107_v24 }
 0x220   :  { %v1551_v59 = vadd.f32 %v1516_v4, %v1463_v48  ;;  %v1012_v52 = vmax.f32 %v1010_v31, %v1011_v9  ;;  %v839_v21 = vpop.permute.xlu0 %838 }
 0x221   :  { %560 = vrot.lane.b32.xlu1 %v528_v19, %s2099_s1  ;;  %v2109_v19 = vmov 0.0   ;;  %v878_v56 = vadd.f32 %v839_v21, %v790_v62  ;;  %v1625_v62 = vrot.slane %v2981_v41, 4  ;;  %s1826_s1 = sshll.u32 %s2110_s24, 4  ;;  %s1827_s1 = int_to_ptr.vmem [resolvable:$true] %s1826_s1 }
 0x222   :  { %v1608_v36 = vadd.f32 %v3604_v26, %v1551_v59  ;;  %1926 = vmatprep.mubr.msk.f32.mxu1 %vm2108_vm10, %v2109_v19  ;;  %v1061_v44 = vadd.f32 %v2948_v57, %v1012_v52  ;;  %v3606_v59 = vld [vmem:[#allocation41_spill] sm:$0xff]  ;;  %s2067_s25 = scalar_lea.vmem %s1827_s1, 128  ;;  %p2072_p11 = scmp.lt.s32.totalorder %s1827_s1, %s1827_s1 }
 0x223   :  { %v753_v40 = vpop.permute.xlu1 %752  ;;  %p2068_p10 = scmp.ne.s32.totalorder %s1827_s1, %s2067_s25  ;;  %p2073_p12 = scmp.lt.s32.totalorder %s2067_s25, %s2067_s25 }
 0x224   :  { %v1667_v29 = vsel %vm975_vm6, %v1608_v36, -inf  ;;  %v1069_v16 = vmax.f32 %v1061_v44, 0.0  ;;  %v791_v1 = vadd.f32 %v753_v40, %v3580_v55  ;;  %v928_v25 = vpop.permute.xlu0 %927 }
 0x225   :  { %v3228_v12 = vmax.f32 %v1667_v29, %v1668_v28  ;;  %v967_v6 = vadd.f32 %v928_v25, %v878_v56  ;;  %v1643_v25 = vrot.slane %v3050_v20, 4  ;;  %p2074_p13 = por %p2073_p12, %p2072_p11 }
 0x226   :  { %v1092_v34 = vrot.slane %v1069_v16, 5 }
 0x227   :  { %v841_v61 = vpop.permute.xlu1 %840  ;;  %v1013_v48 = vsel %vm975_vm6, %v967_v6, -inf  ;;  %p2075_p0 = pnand %p2074_p13, %p2068_p10 }
 0x228   :  { %v879_v0 = vadd.f32 %v841_v61, %v791_v1  ;;  %v755_v23 = vpop.permute.xlu0 %754  ;;  %v1094_v8 = vsel %vm1093_vm11, %v1092_v34, %v1091_v13  ;;  %v1634_v34 = vrot.slane %v3099_v42, 4 }
 0x229   :  { %v792_v47 = vadd.f32 %v755_v23, %v3606_v59  ;;  %v3607_v23 = vld [vmem:[#allocation45_spill] sm:$0xff] }
 0x22b   :  { %v930_v15 = vpop.permute.xlu1 %929 }
 0x22c   :  { %v968_v39 = vadd.f32 %v930_v15, %v879_v0  ;;  %v843_v4 = vpop.permute.xlu0 %842  ;;  %v1661_v15 = vrot.slane %v3147_v2, 4 }
 0x22d   :  { %v880_v40 = vadd.f32 %v843_v4, %v792_v47  ;;  %v1670_v47 = vrot.slane %v3228_v12, 4 }
 0x22e   :  { %v1014_v11 = vsel %vm977_vm7, %v968_v39, -inf  ;;  %v1652_v39 = vrot.slane %v3163_v43, 4 }
 0x22f   :  { %v1015_v32 = vmax.f32 %v1013_v48, %v1014_v11  ;;  %v757_v7 = vpop.permute.xlu1 %756  ;;  %v1626_v11 = vmax.f32 %v2981_v41, %v1625_v62  ;;  %v1662_v41 = vmax.f32 %v3147_v2, %v1661_v15 }
 0x230   :  { %v793_v36 = vadd.f32 %v757_v7, %v3588_v17  ;;  %v932_v58 = vpop.permute.xlu0 %931 }
 0x231   :  { %v1016_v31 = vrot.slane %v1015_v32, 4  ;;  %v969_v52 = vadd.f32 %v932_v58, %v880_v40  ;;  %v1644_v40 = vmax.f32 %v3050_v20, %v1643_v25  ;;  %v1635_v58 = vmax.f32 %v3099_v42, %v1634_v34 }
 0x233   :  { %v1017_v9 = vmax.f32 %v1015_v32, %v1016_v31  ;;  %v845_v26 = vpop.permute.xlu1 %844  ;;  %v1022_v37 = vsel %vm975_vm6, %v969_v52, -inf  ;;  %v1617_v32 = vmax.f32 %v3021_v22, %v1616_v63  ;;  %v1653_v22 = vmax.f32 %v3163_v43, %v1652_v39 }
 0x234   :  { %v881_v50 = vadd.f32 %v845_v26, %v793_v36  ;;  %v759_v21 = vpop.permute.xlu0 %758  ;;  %v1645_v63 = vrot.slane %v1644_v40, 2  ;;  %v1636_v42 = vrot.slane %v1635_v58, 2 }
 0x235   :  { %v1018_v33 = vrot.slane %v1017_v9, 2  ;;  %v794_v48 = vadd.f32 %v759_v21, %v3607_v23 }
 0x236   :  { %v1646_v39 = vmax.f32 %v1644_v40, %v1645_v63 }
 0x237   :  { %v1019_v13 = vmax.f32 %v1017_v9, %v1018_v33  ;;  %v934_v29 = vpop.permute.xlu1 %933 }
 0x238   :  { %v970_v28 = vadd.f32 %v934_v29, %v881_v50  ;;  %v847_v56 = vpop.permute.xlu0 %846  ;;  %v1627_v29 = vrot.slane %v1626_v11, 2  ;;  %v1647_v40 = vrot.slane %v1646_v39, 1 }
 0x239   :  { %v1020_v10 = vrot.slane %v1019_v13, 1  ;;  %v882_v26 = vadd.f32 %v847_v56, %v794_v48 }
 0x23a   :  { %v1023_v44 = vsel %vm977_vm7, %v970_v28, -inf  ;;  %v1618_v28 = vrot.slane %v1617_v32, 2  ;;  %v1628_v56 = vmax.f32 %v1626_v11, %v1627_v29 }
 0x23b   :  { %v1021_v61 = vmax.f32 %v1019_v13, %v1020_v10  ;;  %v1024_v16 = vmax.f32 %v1022_v37, %v1023_v44  ;;  %v761_v1 = vpop.permute.xlu1 %760  ;;  %v1671_v44 = vmax.f32 %v3228_v12, %v1670_v47  ;;  %v1637_v12 = vmax.f32 %v1635_v58, %v1636_v42 }
 0x23c   :  { %v795_v9 = vadd.f32 %v761_v1, %v2779_v5  ;;  %v936_v36 = vpop.permute.xlu0 %935  ;;  %v1654_v1 = vrot.slane %v1653_v22, 2  ;;  %v1619_v25 = vmax.f32 %v1617_v32, %v1618_v28 }
 0x23d   :  { %v1062_v0 = vadd.f32 %v2948_v57, %v1021_v61  ;;  %v1025_v6 = vrot.slane %v1024_v16, 4  ;;  %v971_v13 = vadd.f32 %v936_v36, %v882_v26  ;;  %v1672_v15 = vrot.slane %v1671_v44, 2 }
 0x23e   :  { %v1620_v26 = vrot.slane %v1619_v25, 1  ;;  %v1638_v58 = vrot.slane %v1637_v12, 1 }
 0x23f   :  { %v1070_v7 = vmax.f32 %v1062_v0, 0.0  ;;  %v1026_v4 = vmax.f32 %v1024_v16, %v1025_v6  ;;  %v849_v31 = vpop.permute.xlu1 %848  ;;  %v1663_v16 = vrot.slane %v1662_v41, 2  ;;  %v1031_v2 = vsel %vm975_vm6, %v971_v13, -inf }
 0x240   :  { %v883_v52 = vadd.f32 %v849_v31, %v795_v9  ;;  %v763_v20 = vpop.permute.xlu0 %762  ;;  %v1655_v31 = vmax.f32 %v1653_v22, %v1654_v1  ;;  %v1629_v9 = vrot.slane %v1628_v56, 1  ;;  %v1673_v32 = vmax.f32 %v1671_v44, %v1672_v15 }
 0x241   :  { %v1095_v33 = vrot.slane %v1070_v7, 4  ;;  %v1027_v50 = vrot.slane %v1026_v4, 2  ;;  %v796_v47 = vadd.f32 %v763_v20, %v2811_v46 }
 0x242   :  { %v1630_v42 = vmax.f32 %v1628_v56, %v1629_v9  ;;  %v1674_v44 = vrot.slane %v1673_v32, 1 }
 0x243   :  { %v1028_v21 = vmax.f32 %v1026_v4, %v1027_v50  ;;  %v938_v10 = vpop.permute.xlu1 %937  ;;  %v1097_v37 = vsel %vm1096_vm12, %v1095_v33, %v1094_v8  ;;  %v1664_v4 = vmax.f32 %v1662_v41, %v1663_v16  ;;  %v1656_v41 = vrot.slane %v1655_v31, 1 }
 0x244   :  { %v972_v62 = vadd.f32 %v938_v10, %v883_v52  ;;  %v851_v8 = vpop.permute.xlu0 %850 }
 0x245   :  { %v1029_v61 = vrot.slane %v1028_v21, 1  ;;  %v884_v52 = vadd.f32 %v851_v8, %v796_v47  ;;  %v1657_v15 = vmax.f32 %v1655_v31, %v1656_v41 }
 0x246   :  { %v1032_v43 = vsel %vm977_vm7, %v972_v62, -inf }
 0x247   :  { %v1030_v34 = vmax.f32 %v1028_v21, %v1029_v61  ;;  %v1033_v0 = vmax.f32 %v1031_v2, %v1032_v43  ;;  %v765_v6 = vpop.permute.xlu1 %764  ;;  %v1665_v21 = vrot.slane %v1664_v4, 1  ;;  %v1621_v61 = vmax.f32 %v1619_v25, %v1620_v26 }
 0x248   :  { %v797_v50 = vadd.f32 %v765_v6, %v2830_v49  ;;  %v940_v13 = vpop.permute.xlu0 %939  ;;  %v1648_v2 = vmax.f32 %v1646_v39, %v1647_v40  ;;  %v1639_v43 = vmax.f32 %v1637_v12, %v1638_v58  ;;  %v3608_v25 = vrot.slane %v2461_v18, 4 }
 0x249   :  { %v1063_v48 = vadd.f32 %v2948_v57, %v1030_v34  ;;  %v1034_v7 = vrot.slane %v1033_v0, 4  ;;  %v973_v10 = vadd.f32 %v940_v13, %v884_v52  ;;  %v1666_v6 = vmax.f32 %v1664_v4, %v1665_v21 }
 0x24a   :  { %v1675_v39 = vmax.f32 %v1673_v32, %v1674_v44 }
 0x24b   :  { %v1071_v36 = vmax.f32 %v1063_v48, 0.0  ;;  %v1035_v33 = vmax.f32 %v1033_v0, %v1034_v7  ;;  %v853_v11 = vpop.permute.xlu1 %852  ;;  %v1040_v8 = vsel %vm975_vm6, %v973_v10, -inf  ;;  %v1676_v7 = vsel %vm975_vm6, %v3215_v51, -inf }
 0x24c   :  { %v885_v22 = vadd.f32 %v853_v11, %v797_v50  ;;  %v1522_v1 = vpop.permute.xlu0 %1521 }
 0x24d   :  { %v1036_v29 = vrot.slane %v1035_v33, 2  ;;  %v1098_v28 = vrot.slane %v1071_v36, 3  ;;  %v1554_v0 = vadd.f32 %v1522_v1, %v3165_v53 }
 0x24f   :  { %v1037_v62 = vmax.f32 %v1035_v33, %v1036_v29  ;;  %v942_v20 = vpop.permute.xlu1 %941  ;;  %v1100_v63 = vsel %vm1099_vm13, %v1098_v28, %v1097_v37  ;;  %v1611_v47 = vadd.f32 %v3608_v25, %v1554_v0 }
 0x250   :  { %v974_v16 = vadd.f32 %v942_v20, %v885_v22  ;;  %v446_v53 = vpop.permute.xlu0 %445 }
 0x251   :  { %v1038_v34 = vrot.slane %v1037_v62, 1  ;;  %v1677_v31 = vsel %vm1613_vm5, %v1611_v47, -inf }
 0x252   :  { %v1041_v48 = vsel %vm977_vm7, %v974_v16, -inf  ;;  %v1678_v50 = vmax.f32 %v1676_v7, %v1677_v31 }
 0x253   :  { %v1039_v37 = vmax.f32 %v1037_v62, %v1038_v34  ;;  %v1042_v56 = vmax.f32 %v1040_v8, %v1041_v48  ;;  %v1692_v9 = vpop.permute.xlu1 %1691 }
 0x254   :  { %v1694_v12 = vadd.f32 %v1692_v9, %v1621_v61  ;;  %v1695_v26 = vadd.f32 %v1692_v9, %v1630_v42  ;;  %v1696_v36 = vadd.f32 %v1692_v9, %v1639_v43  ;;  %v1697_v11 = vadd.f32 %v1692_v9, %v1648_v2  ;;  %v450_v21 = vpop.permute.xlu0 %449 }
 0x255   :  { %v1043_v4 = vrot.slane %v1042_v56, 4  ;;  %v1064_v33 = vadd.f32 %v2948_v57, %v1039_v37  ;;  %v1698_v51 = vadd.f32 %v1692_v9, %v1657_v15  ;;  %v1699_v18 = vadd.f32 %v1692_v9, %v1666_v6 }
 0x256   :  { %v1703_v52 = vmax.f32 %v1695_v26, 0.0  ;;  %v1700_v29 = vadd.f32 %v1692_v9, %v1675_v39  ;;  %v1679_v28 = vrot.slane %v1678_v50, 4  ;;  %v1704_v41 = vmax.f32 %v1696_v36, 0.0 }
 0x257   :  { %v1044_v13 = vmax.f32 %v1042_v56, %v1043_v4  ;;  %v448_v40 = vpop.permute.xlu1 %447  ;;  %v1072_v58 = vmax.f32 %v1064_v33, 0.0  ;;  %v1702_v10 = vmax.f32 %v1694_v12, 0.0  ;;  %v1705_v20 = vmax.f32 %v1697_v11, 0.0 }
 0x258   :  { %v1722_v32 = vrot.slane %v1703_v52, 7  ;;  %v1680_v42 = vmax.f32 %v1678_v50, %v1679_v28  ;;  %v1706_v61 = vmax.f32 %v1698_v51, 0.0  ;;  %v1707_v44 = vmax.f32 %v1699_v18, 0.0  ;;  %v442_v15 = vpop.permute.xlu0 %441 }
 0x259   :  { %v1045_v22 = vrot.slane %v1044_v13, 2  ;;  %v1101_v62 = vrot.slane %v1072_v58, 2  ;;  %v1708_v16 = vmax.f32 %v1700_v29, 0.0  ;;  %v1724_v0 = vrot.slane %v1704_v41, 6 }
 0x25a   :  { %v1723_v34 = vsel %vm1087_vm8, %v1722_v32, %v1702_v10  ;;  %v1681_v6 = vrot.slane %v1680_v42, 2  ;;  %v1726_v8 = vrot.slane %v1705_v20, 5  ;;  %v1728_v37 = vrot.slane %v1706_v61, 4 }
 0x25b   :  { %v1046_v1 = vmax.f32 %v1044_v13, %v1045_v22  ;;  %v452_v2 = vpop.permute.xlu1 %451  ;;  %v1103_v43 = vsel %vm1102_vm14, %v1101_v62, %v1100_v63  ;;  %v1725_v7 = vsel %vm1090_vm9, %v1724_v0, %v1723_v34  ;;  %v1730_v47 = vrot.slane %v1707_v44, 3 }
 0x25c   :  { %v1682_v56 = vmax.f32 %v1680_v42, %v1681_v6  ;;  %v1727_v25 = vsel %vm1093_vm11, %v1726_v8, %v1725_v7  ;;  %v1732_v36 = vrot.slane %v1708_v16, 2  ;;  %v454_v4 = vpop.permute.xlu0 %453  ;;  %v491_v13 = vadd.f32 %v446_v53, %v2296_v3 }
 0x25d   :  { %v1047_v48 = vrot.slane %v1046_v1, 1  ;;  %v1729_v26 = vsel %vm1096_vm12, %v1728_v37, %v1727_v25  ;;  %v492_v28 = vadd.f32 %v448_v40, %v2319_v14  ;;  %v493_v14 = vadd.f32 %v450_v21, %v3584_v30 }
 0x25e   :  { %v1683_v63 = vrot.slane %v1682_v56, 1  ;;  %v1731_v31 = vsel %vm1099_vm13, %v1730_v47, %v1729_v26  ;;  %v494_v16 = vadd.f32 %v452_v2, %v2406_v54  ;;  %v489_v25 = vadd.f32 %v442_v15, %v2224_v27 }
 0x25f   :  { %v1048_v39 = vmax.f32 %v1046_v1, %v1047_v48  ;;  %v444_v12 = vpop.permute.xlu1 %443  ;;  %v1733_v11 = vsel %vm1102_vm14, %v1732_v36, %v1731_v31  ;;  %v495_v36 = vadd.f32 %v454_v4, %v3596_v60 }
 0x260   :  { %v1684_v50 = vmax.f32 %v1682_v56, %v1683_v63  ;;  %v535_v58 = vpop.permute.xlu0 %534  ;;  %v490_v21 = vadd.f32 %v444_v12, %v2239_v38 }
 0x261   :  { %v1065_v33 = vadd.f32 %v2948_v57, %v1048_v39  ;;  %v580_v32 = vadd.f32 %v535_v58, %v491_v13 }
 0x262   :  { %v1701_v18 = vadd.f32 %v1692_v9, %v1684_v50 }
 0x263   :  { %v456_v52 = vpop.permute.xlu1 %455  ;;  %v1073_v51 = vmax.f32 %v1065_v33, 0.0  ;;  %v604_v42 = vsel %vm165_vm0, %v580_v32, -inf }
 0x264   :  { %v1709_v41 = vmax.f32 %v1701_v18, 0.0  ;;  %v458_v62 = vpop.permute.xlu0 %457 }
 0x265   :  { %v1104_v29 = vrot.slane %v1073_v51, 1 }
 0x266   :  { %v1734_v20 = vrot.slane %v1709_v41, 1 }
 0x267   :  { %v537_v22 = vpop.permute.xlu1 %536  ;;  %v1106_v10 = vsel %vm1105_vm15, %v1104_v29, %v1103_v43 }
 0x268   :  { %v581_v57 = vadd.f32 %v537_v22, %v492_v28  ;;  %1107 = vrot.lane.b32.xlu0 %v1106_v10, %s2106_s3  ;;  %v1735_v9 = vsel %vm1105_vm15, %v1734_v20, %v1733_v11  ;;  %v539_v40 = vpop.permute.xlu0 %538  ;;  %v496_v11 = vadd.f32 %v456_v52, %v3573_v45  ;;  %v3306_v22 = vld [vmem:[%s3366_s2] ss:$0 sm:$0xff]  ;;  %v497_v10 = vadd.f32 %v458_v62, %v3605_v35 }
 0x269   :  { %1736 = vrot.lane.b32.xlu1 %v1735_v9, %s2106_s3  ;;  %v582_v1 = vadd.f32 %v539_v40, %v493_v14 }
 0x26a   :  { %v605_v3 = vsel %vm595_vm1, %v581_v57, -inf }
 0x26b   :  { %v606_v53 = vmax.f32 %v604_v42, %v605_v3  ;;  %v460_v61 = vpop.permute.xlu1 %459  ;;  %v613_v8 = vsel %vm165_vm0, %v582_v1, -inf }
 0x26c   :  { %v462_v6 = vpop.permute.xlu0 %461  ;;  %v498_v9 = vadd.f32 %v460_v61, %v3580_v55 }
 0x26d   :  { %v607_v44 = vrot.slane %v606_v53, 4 }
 0x26f   :  { %v608_v43 = vmax.f32 %v606_v53, %v607_v44  ;;  %v541_v34 = vpop.permute.xlu1 %540 }
 0x270   :  { %v583_v0 = vadd.f32 %v541_v34, %v494_v16 }
 0x271   :  { %v609_v7 = vrot.slane %v608_v43, 2 }
 0x272   :  { %v614_v48 = vsel %vm595_vm1, %v583_v0, -inf }
 0x273   :  { %v615_v37 = vmax.f32 %v613_v8, %v614_v48  ;;  %v464_v56 = vpop.permute.xlu1 %463  ;;  %v531_v47 = vpop.permute.xlu0 %530  ;;  %v610_v54 = vmax.f32 %v608_v43, %v609_v7 }
 0x274   :  { %v578_v39 = vadd.f32 %v531_v47, %v489_v25  ;;  %v499_v47 = vadd.f32 %v462_v6, %v3606_v59 }
 0x275   :  { %v616_v30 = vrot.slane %v615_v37, 4  ;;  %v611_v15 = vrot.slane %v610_v54, 1 }
 0x276   :  { %v594_v50 = vsel %vm165_vm0, %v578_v39, -inf }
 0x277   :  { %v617_v2 = vmax.f32 %v615_v37, %v616_v30  ;;  %v533_v26 = vpop.permute.xlu1 %532  ;;  %v543_v31 = vpop.permute.xlu0 %542  ;;  %v612_v32 = vmax.f32 %v610_v54, %v611_v15 }
 0x278   :  { %v579_v63 = vadd.f32 %v533_v26, %v490_v21  ;;  %v584_v27 = vadd.f32 %v543_v31, %v495_v36 }
 0x279   :  { %v618_v33 = vrot.slane %v617_v2, 2  ;;  %v675_v14 = vadd.f32 %v3306_v22, %v612_v32 }
 0x27a   :  { %v596_v51 = vsel %vm595_vm1, %v579_v63, -inf  ;;  %v622_v60 = vsel %vm165_vm0, %v584_v27, -inf }
 0x27b   :  { %v619_v13 = vmax.f32 %v617_v2, %v618_v33  ;;  %v597_v58 = vmax.f32 %v594_v50, %v596_v51  ;;  %v545_v38 = vpop.permute.xlu1 %544  ;;  %v466_v18 = vpop.permute.xlu0 %465  ;;  %v683_v48 = vmax.f32 %v675_v14, 0.0  ;;  %v500_v2 = vadd.f32 %v464_v56, %v3588_v17 }
 0x27c   :  { %v585_v12 = vadd.f32 %v545_v38, %v496_v11  ;;  %v501_v51 = vadd.f32 %v466_v18, %v3607_v23 }
 0x27d   :  { %v620_v29 = vrot.slane %v619_v13, 1  ;;  %v598_v28 = vrot.slane %v597_v58, 4  ;;  %v1189_v36 = vrot.slane %v683_v48, 7 }
 0x27e   :  { %v623_v4 = vsel %vm595_vm1, %v585_v12, -inf }
 0x27f   :  { %v599_v41 = vmax.f32 %v597_v58, %v598_v28  ;;  %v624_v45 = vmax.f32 %v622_v60, %v623_v4  ;;  %v468_v52 = vpop.permute.xlu1 %467  ;;  %v621_v57 = vmax.f32 %v619_v13, %v620_v29  ;;  %v547_v20 = vpop.permute.xlu0 %546 }
 0x280   :  { %v586_v53 = vadd.f32 %v547_v20, %v497_v10  ;;  %v502_v13 = vadd.f32 %v468_v52, %v2779_v5 }
 0x281   :  { %v600_v42 = vrot.slane %v599_v41, 2  ;;  %v625_v3 = vrot.slane %v624_v45, 4  ;;  %v676_v1 = vadd.f32 %v3306_v22, %v621_v57 }
 0x282   :  { %v631_v35 = vsel %vm165_vm0, %v586_v53, -inf }
 0x283   :  { %v601_v40 = vmax.f32 %v599_v41, %v600_v42  ;;  %v626_v44 = vmax.f32 %v624_v45, %v625_v3  ;;  %v549_v16 = vpop.permute.xlu1 %548  ;;  %v470_v34 = vpop.permute.xlu0 %469  ;;  %v684_v25 = vmax.f32 %v676_v1, 0.0 }
 0x284   :  { %v587_v43 = vadd.f32 %v549_v16, %v498_v9  ;;  %v503_v18 = vadd.f32 %v470_v34, %v2811_v46 }
 0x285   :  { %v602_v0 = vrot.slane %v601_v40, 1  ;;  %v627_v8 = vrot.slane %v626_v44, 2  ;;  %v1191_v50 = vrot.slane %v684_v25, 6 }
 0x286   :  { %v632_v62 = vsel %vm595_vm1, %v587_v43, -inf }
 0x287   :  { %v603_v7 = vmax.f32 %v601_v40, %v602_v0  ;;  %v628_v37 = vmax.f32 %v626_v44, %v627_v8  ;;  %v633_v55 = vmax.f32 %v631_v35, %v632_v62  ;;  %v472_v61 = vpop.permute.xlu1 %471  ;;  %v551_v30 = vpop.permute.xlu0 %550 }
 0x288   :  { %v588_v26 = vadd.f32 %v551_v30, %v499_v47  ;;  %v504_v5 = vadd.f32 %v472_v61, %v2830_v49 }
 0x289   :  { %v674_v21 = vadd.f32 %v3306_v22, %v603_v7  ;;  %v629_v39 = vrot.slane %v628_v37, 1  ;;  %v634_v54 = vrot.slane %v633_v55, 4 }
 0x28a   :  { %v640_v17 = vsel %vm165_vm0, %v588_v26, -inf }
 0x28b   :  { %v682_v63 = vmax.f32 %v674_v21, 0.0  ;;  %v630_v31 = vmax.f32 %v628_v37, %v629_v39  ;;  %v635_v33 = vmax.f32 %v633_v55, %v634_v54  ;;  %v553_v11 = vpop.permute.xlu1 %552  ;;  %v555_v15 = vpop.permute.xlu0 %554 }
 0x28c   :  { %v589_v27 = vadd.f32 %v553_v11, %v500_v2  ;;  %v590_v38 = vadd.f32 %v555_v15, %v501_v51 }
 0x28d   :  { %v1190_v59 = vsel %vm1087_vm8, %v1189_v36, %v682_v63  ;;  %v677_v6 = vadd.f32 %v3306_v22, %v630_v31  ;;  %v636_v58 = vrot.slane %v635_v33, 2 }
 0x28e   :  { %v641_v56 = vsel %vm595_vm1, %v589_v27, -inf  ;;  %v1192_v12 = vsel %vm1090_vm9, %v1191_v50, %v1190_v59  ;;  %v649_v52 = vsel %vm165_vm0, %v590_v38, -inf  ;;  %v693_v38 = vld [vmem:[#allocation7 + $0x18] sm:$0xff] }
 0x28f   :  { %v685_v29 = vmax.f32 %v677_v6, 0.0  ;;  %v637_v28 = vmax.f32 %v635_v33, %v636_v58  ;;  %v642_v60 = vmax.f32 %v640_v17, %v641_v56  ;;  %v557_v23 = vpop.permute.xlu1 %556  ;;  %v559_v32 = vpop.permute.xlu0 %558  ;;  %v691_v58 = vld [vmem:[#allocation7 + $0x8] sm:$0xff]  ;;  %v692_v56 = vld [vmem:[#allocation7 + $0x10] sm:$0xff] }
 0x290   :  { %v591_v4 = vadd.f32 %v557_v23, %v502_v13  ;;  %v592_v20 = vadd.f32 %v559_v32, %v503_v18  ;;  %v690_v13 = vld [vmem:[#allocation7] sm:$0xff]  ;;  %v1712_v23 = vld [vmem:[#allocation7 + $0x50] sm:$0xff]  ;;  %v1713_v18 = vld [vmem:[#allocation7 + $0x58] sm:$0xff] }
 0x291   :  { %v1193_v41 = vrot.slane %v685_v29, 5  ;;  %v638_v45 = vrot.slane %v637_v28, 1  ;;  %v643_v10 = vrot.slane %v642_v60, 4  ;;  %v1958_v17 = vpack.c.bf16 %v691_v58, %v690_v13 }
 0x292   :  { %v650_v57 = vsel %vm595_vm1, %v591_v4, -inf  ;;  %v658_v1 = vsel %vm165_vm0, %v592_v20, -inf  ;;  %v1961_v29 = vpack.c.bf16 %v693_v38, %v692_v56  ;;  %v1967_v4 = vpack.c.bf16 %v1713_v18, %v1712_v23  ;;  %v1872_v20 = vld [vmem:[%s3370_s6] ss:$0 sm:$0xff] }
 0x293   :  { %v639_v42 = vmax.f32 %v637_v28, %v638_v45  ;;  %v644_v3 = vmax.f32 %v642_v60, %v643_v10  ;;  %v651_v9 = vmax.f32 %v649_v52, %v650_v57  ;;  %v561_v53 = vpop.permute.xlu1 %560  ;;  %v1194_v40 = vsel %vm1093_vm11, %v1193_v41, %v1192_v12  ;;  %v1711_v28 = vld [vmem:[#allocation7 + $0x48] sm:$0xff] }
 0x294   :  { %v593_v14 = vadd.f32 %v561_v53, %v504_v5 }
 0x295   :  { %v678_v46 = vadd.f32 %v3306_v22, %v639_v42  ;;  %v645_v44 = vrot.slane %v644_v3, 2  ;;  %v652_v16 = vrot.slane %v651_v9, 4 }
 0x296   :  { %v659_v49 = vsel %vm595_vm1, %v593_v14, -inf }
 0x297   :  { %v686_v43 = vmax.f32 %v678_v46, 0.0  ;;  %v646_v34 = vmax.f32 %v644_v3, %v645_v44  ;;  %v653_v0 = vmax.f32 %v651_v9, %v652_v16  ;;  %v660_v8 = vmax.f32 %v658_v1, %v659_v49 }
 0x299   :  { %v1195_v35 = vrot.slane %v686_v43, 4  ;;  %v647_v62 = vrot.slane %v646_v34, 1  ;;  %v654_v48 = vrot.slane %v653_v0, 2  ;;  %v661_v7 = vrot.slane %v660_v8, 4 }
 0x29b   :  { %v648_v37 = vmax.f32 %v646_v34, %v647_v62  ;;  %v655_v55 = vmax.f32 %v653_v0, %v654_v48  ;;  %v662_v61 = vmax.f32 %v660_v8, %v661_v7  ;;  %v1196_v25 = vsel %vm1096_vm12, %v1195_v35, %v1194_v40 }
 0x29d   :  { %v679_v47 = vadd.f32 %v3306_v22, %v648_v37  ;;  %v656_v30 = vrot.slane %v655_v55, 1  ;;  %v663_v21 = vrot.slane %v662_v61, 2 }
 0x29f   :  { %v687_v39 = vmax.f32 %v679_v47, 0.0  ;;  %v657_v54 = vmax.f32 %v655_v55, %v656_v30  ;;  %v664_v2 = vmax.f32 %v662_v61, %v663_v21 }
 0x2a1   :  { %v1197_v26 = vrot.slane %v687_v39, 3  ;;  %v680_v36 = vadd.f32 %v3306_v22, %v657_v54  ;;  %v665_v63 = vrot.slane %v664_v2, 1 }
 0x2a3   :  { %v688_v31 = vmax.f32 %v680_v36, 0.0  ;;  %v666_v33 = vmax.f32 %v664_v2, %v665_v63  ;;  %v1198_v11 = vsel %vm1099_vm13, %v1197_v26, %v1196_v25 }
 0x2a5   :  { %v681_v50 = vadd.f32 %v3306_v22, %v666_v33  ;;  %v1199_v51 = vrot.slane %v688_v31, 2  ;;  %v1710_v22 = vld [vmem:[#allocation7 + $0x40] sm:$0xff] }
 0x2a6   :  { %v1964_v60 = vpack.c.bf16 %v1711_v28, %v1710_v22 }
 0x2a7   :  { %v689_v27 = vmax.f32 %v681_v50, 0.0  ;;  %v1200_v15 = vsel %vm1102_vm14, %v1199_v51, %v1198_v11 }
 0x2a9   :  { %v1201_v59 = vrot.slane %v689_v27, 1 }
 0x2ab   :  { %v1202_v6 = vsel %vm1105_vm15, %v1201_v59, %v1200_v15 }
 0x2da   :  { %v1108_v12 = vpop.permute.xlu0 %1107 }
 0x2db   :  { %1927 = vmatmul.mubr.msk.f32.vlgmr.msra.gmra.mrb[16].mxu1 %vm165_vm0, %v1108_v12  ;;  %v1737_v32 = vpop.permute.xlu1 %1736 }
 0x2dc   :  { %1959 = vmatpush3.bf16.msra.mxu1 %v1958_v17  ;;  %1937 = vmatprep.mubr.msk.f32.mxu1 %vm2108_vm10, %v2109_v19 }
 0x2dd   :  { %1960 = vmatprep.subr.bf16.mxu1 %v2107_v24 }
 0x2e0   :  { %1962 = vmatpush3.bf16.msra.mxu1 %v1961_v29 }
 0x2e1   :  { %1963 = vmatprep.subr.bf16.mxu1 %v2107_v24 }
 0x2e3   :  { %1938 = vmatmul.mubr.msk.f32.vlgmr.msra.gmra.mrb[18].mxu1 %vm165_vm0, %v1202_v6 }
 0x2e4   :  { %1965 = vmatpush3.bf16.msra.mxu1 %v1964_v60  ;;  %1948 = vmatprep.mubr.msk.f32.mxu1 %vm2108_vm10, %v2109_v19 }
 0x2e5   :  { %1966 = vmatprep.subr.bf16.mxu1 %v2107_v24 }
 0x2e8   :  { %1968 = vmatpush3.bf16.msra.mxu1 %v1967_v4 }
 0x2eb   :  { %1949 = vmatmul.mubr.msk.f32.vlgmr.msra.gmra.mrb[20].mxu1 %vm165_vm0, %v1737_v32 }
 0x3ae   :  { %v1177_v41 = vpop.f32.mrb[16].mxu1 }
 0x3af   :  { %v1928_v45 = vpop.f32.mrb[17].mxu1 }
 0x3b6   :  { %v1271_v10 = vpop.f32.mrb[18].mxu1 }
 0x3b7   :  { %v1272_v5 = vadd.f32 %v1271_v10, %v1177_v41  ;;  %v1939_v52 = vpop.f32.mrb[19].mxu1 }
 0x3be   :  { %v1806_v57 = vpop.f32.mrb[20].mxu1 }
 0x3bf   :  { %v1810_v42 = vadd.f32 %v1806_v57, %v1272_v5  ;;  %v1950_v19 = vpop.f32.mrb[21].mxu1 }
 0x3c1   :  { %v1818_v3 = vadd.f32 %v1872_v20, %v1810_v42 }
 0x3c3   :  { %1819 = vst [vmem:[#allocation8] sm:$0xff] %v1818_v3 }
 0x3c4   :  { %2078 = shalt.err (!%p2075_p0)
}
 0x3c5   :  { %s2079_s28 = scalar_lea.hbm %s3371_s7, 128 }
 0x3c6   :  { %p2080_p1 = scmp.ne.s32.totalorder %s3371_s7, %s2079_s28  ;;  %p2083_p2 = scmp.lt.u32.totalorder %s2079_s28, %s3371_s7 }
 0x3c8   :  { %p2085_p3 = pnand %p2083_p2, %p2080_p1 }
 0x3ca   :  { %2088 = shalt.err (!%p2085_p3)
}
 0x3cb   :  { %1829 = dma.vmem_to_hbm [thread:$0]  %s1827_s1, 128, %s3371_s7, [#allocation4]  }
 0x3cc   :  { %2093 = dma.done.wait [#allocation4], 128  }
 0x3cd   :  { %2094 = vsyncadd [#allocation4], 4294967168 }
 0x3ce   :  { %1833 = vsyncpa [#allocation3], 1 }
 0x3cf   :  { %1834 = vsyncpa [#allocation6], 1 }
 0x3d0   :  { %1835 = vsyncpa [#allocation4], 1 }

</bundles_post_ra>
